<compile_context>
chip_gen: v7x
topology: tpu7x:2x2x1
jax: 0.10.0
libtpu: 0.0.40
codegen_flags: <defaults>
</compile_context>

<pallas_src>
import functools

import jax
import jax.numpy as jnp
from jax import lax
from jax.experimental import pallas as pl
from jax.experimental.pallas import tpu as pltpu

# ---------------- synthetic config (small shapes) ----------------
B = 2                    # batch
S = 6                    # gene sequence length
A = 2                    # number of auxiliary tokens
L = A + S                # transformer sequence length (= 8, one sublane tile)
EMB_IN = 16              # pretrained gene-embedding input dim
D = 32                   # embed_dim
H = 2                    # num_heads
DH = D // H
FF = 64                  # model_dim (feed-forward hidden)
NLAYERS = 2
GENE_VOCAB = 16
AUX_VOCABS = (6, 5)      # per-aux-field vocab sizes
GENE_HEAD_HIDDEN = 32
SOFTCAP = 30.0
EPS = 1e-4               # log_counts_eps
PAD_IDX, START_IDX, END_IDX = 1, 2, 3
AUX_PAD_IDS = (0, 0)     # 'unknown' id per aux field


# ---------------- fused transformer-layer math (shared by both kernels) -----
def _layer_math(x_ref, lc_ref, keep_ref,
                ln1g_ref, ln1b_ref, wqkv_ref, bqkv_ref, wo_ref, bo_ref,
                ln2g_ref, ln2b_ref, w1_ref, b1_ref, w2_ref, b2_ref,
                *, batch, seqlen, nheads, scale, softcap, emb_mode):
    f32, bf16 = jnp.float32, jnp.bfloat16
    BL, Dm = x_ref.shape              # (B*L, D) whole batch, flat
    dh = Dm // nheads

    x = x_ref[...].astype(f32)        # bf16 residual stream -> f32

    def ln(v, g_ref, b_ref):
        mu = jnp.mean(v, axis=-1, keepdims=True)
        var = jnp.mean((v - mu) * (v - mu), axis=-1, keepdims=True)
        return (v - mu) * lax.rsqrt(var + 1e-5) * g_ref[...] + b_ref[...]

    # ---- LN1 + fused QKV projection on the full (B*L, D) slab
    h1 = ln(x, ln1g_ref, ln1b_ref)
    qkv = (jnp.dot(h1.astype(bf16), wqkv_ref[...],
                   preferred_element_type=f32) + bqkv_ref[...])     # (B*L, 3D)
    qkv3 = qkv.reshape(batch, seqlen, 3 * Dm)                       # tile-aligned

    # ---- attention bias / mask, computed once, shared by all heads
    lc = lc_ref[...]                   # (B, 1, L) log1p(rs_counts + eps)
    keep = keep_ref[...]               # (B, 1, L) 1.0 = not padding
    row = lax.broadcasted_iota(jnp.int32, (seqlen, seqlen), 0)
    col = lax.broadcasted_iota(jnp.int32, (seqlen, seqlen), 1)
    causal = (row >= col)[None, :, :]                               # (1, L, L)
    # mask_mod: causal AND key-not-pad (finite -1e30 avoids NaN on all-pad rows)
    allow = jnp.logical_and(causal, keep > 0.5)                     # (B, L, L)
    # score_mod: bias = log_counts[kv] * ((q_idx > kv_idx) | emb_mode)
    if emb_mode:
        bias = lc                                                   # (B, 1, L)
    else:
        bias = lc * (row > col)[None, :, :].astype(f32)             # (B, L, L)

    # ---- multi-head attention, batch-batched per head; head merge in Wo
    attn = jnp.zeros((BL, Dm), f32)
    for hh in range(nheads):
        q_h = qkv3[:, :, hh * dh:(hh + 1) * dh].astype(bf16)
        k_h = qkv3[:, :, Dm + hh * dh:Dm + (hh + 1) * dh].astype(bf16)
        v_h = qkv3[:, :, 2 * Dm + hh * dh:2 * Dm + (hh + 1) * dh].astype(bf16)

        s = jnp.einsum('bqd,bkd->bqk', q_h, k_h,
                       preferred_element_type=f32) * scale          # (B, L, L)
        s = s + bias
        if softcap > 0:
            s = softcap * jnp.tanh(s * (1.0 / softcap))
        s = jnp.where(allow, s, -1e30)

        s = s - jnp.max(s, axis=-1, keepdims=True)
        p = jnp.exp(s)
        p = p / jnp.sum(p, axis=-1, keepdims=True)                  # exact recip

        o_h = jnp.einsum('bqk,bkd->bqd', p.astype(bf16), v_h,
                         preferred_element_type=f32)                # (B, L, dh)
        # concat(heads) @ Wo  ==  sum_h  o_h @ Wo[h*dh:(h+1)*dh, :]
        attn = attn + jnp.dot(o_h.reshape(BL, dh).astype(bf16),
                              wo_ref[hh * dh:(hh + 1) * dh, :],
                              preferred_element_type=f32)

    x = x + attn + bo_ref[...]

    # ---- LN2 + FFN
    h2 = ln(x, ln2g_ref, ln2b_ref)
    f1 = (jnp.dot(h2.astype(bf16), w1_ref[...],
                  preferred_element_type=f32) + b1_ref[...])
    # TODO(synk): torch nn.GELU defaults to exact erf; tanh approx used here.
    f1 = jax.nn.gelu(f1)
    f2 = (jnp.dot(f1.astype(bf16), w2_ref[...],
                  preferred_element_type=f32) + b2_ref[...])
    return x + f2                                                   # (B*L, D) f32


def _layer_kernel(x_ref, lc_ref, keep_ref,
                  ln1g, ln1b, wqkv, bqkv, wo, bo, ln2g, ln2b, w1, b1, w2, b2,
                  o_ref, *, batch, seqlen, nheads, scale, softcap, emb_mode):
    xn = _layer_math(x_ref, lc_ref, keep_ref, ln1g, ln1b, wqkv, bqkv, wo, bo,
                     ln2g, ln2b, w1, b1, w2, b2,
                     batch=batch, seqlen=seqlen, nheads=nheads,
                     scale=scale, softcap=softcap, emb_mode=emb_mode)
    o_ref[...] = xn.astype(o_ref.dtype)


def _layer_head_kernel(x_ref, lc_ref, keep_ref,
                       ln1g, ln1b, wqkv, bqkv, wo, bo, ln2g, ln2b, w1, b1, w2, b2,
                       gw1, gb1, gw2, gb2,
                       o_ref, logit_ref,
                       *, batch, seqlen, nheads, scale, softcap, emb_mode):
    f32, bf16 = jnp.float32, jnp.bfloat16
    xn = _layer_math(x_ref, lc_ref, keep_ref, ln1g, ln1b, wqkv, bqkv, wo, bo,
                     ln2g, ln2b, w1, b1, w2, b2,
                     batch=batch, seqlen=seqlen, nheads=nheads,
                     scale=scale, softcap=softcap, emb_mode=emb_mode)
    o_ref[...] = xn.astype(o_ref.dtype)
    # gene-id head MLP fused as epilogue; computed for all rows, aux rows are
    # dropped outside (cheaper than non-contiguous row selection in-kernel).
    hmid = (jnp.dot(xn.astype(bf16), gw1[...],
                    preferred_element_type=f32) + gb1[...])
    hmid = jax.nn.gelu(hmid)
    logit_ref[...] = (jnp.dot(hmid.astype(bf16), gw2[...],
                              preferred_element_type=f32) + gb2[...])


# ---------------- pallas_call wrapper (one fused call per layer) ------------
def _full_spec(shape):
    n = len(shape)
    return pl.BlockSpec(shape, lambda i, _n=n: (0,) * _n)


def transformer_layer(x2, lc3, keep3, lp, emb_mode, head=None):
    """x2: (B*L, D) bf16; lc3/keep3: (B, 1, L) f32."""
    BL, Dm = x2.shape
    batch, _, seqlen = lc3.shape
    args = [x2, lc3, keep3,
            lp['ln1_g'], lp['ln1_b'], lp['wqkv'], lp['bqkv'],
            lp['wo'], lp['bo'], lp['ln2_g'], lp['ln2_b'],
            lp['w1'], lp['b1'], lp['w2'], lp['b2']]
    common = dict(batch=batch, seqlen=seqlen, nheads=H,
                  scale=1.0 / (DH ** 0.5), softcap=SOFTCAP,
                  emb_mode=bool(emb_mode))
    cp = pltpu.CompilerParams(dimension_semantics=("arbitrary",))

    if head is None:
        return pl.pallas_call(
            functools.partial(_layer_kernel, **common),
            out_shape=jax.ShapeDtypeStruct((BL, Dm), jnp.bfloat16),
            grid=(1,),
            in_specs=[_full_spec(a.shape) for a in args],
            out_specs=_full_spec((BL, Dm)),
            compiler_params=cp,
        )(*args)

    gw1, gb1, gw2, gb2 = head
    args += [gw1, gb1, gw2, gb2]
    vocab = gw2.shape[1]
    return pl.pallas_call(
        functools.partial(_layer_head_kernel, **common),
        out_shape=(jax.ShapeDtypeStruct((BL, Dm), jnp.bfloat16),
                   jax.ShapeDtypeStruct((BL, vocab), jnp.float32)),
        grid=(1,),
        in_specs=[_full_spec(a.shape) for a in args],
        out_specs=(_full_spec((BL, Dm)), _full_spec((BL, vocab))),
        compiler_params=cp,
    )(*args)


# ---------------- params ----------------
def init_params(key):
    keys = jax.random.split(key, 64)
    it = iter(keys)
    bf16 = jnp.bfloat16

    def nrm(shape, scale=0.02, dtype=jnp.float32):
        return (scale * jax.random.normal(next(it), shape, jnp.float32)).astype(dtype)

    p = {}
    emb = nrm((GENE_VOCAB, EMB_IN), 1.0)
    # frozen pretrained table: L2 row-normalization hoisted out of forward()
    p['emb_matrix'] = emb / jnp.linalg.norm(emb, axis=-1, keepdims=True)
    p['emb_proj_w'] = nrm((EMB_IN, D), dtype=bf16)
    p['emb_proj_b'] = jnp.zeros((D,), jnp.float32)
    p['aux_emb'] = [nrm((v, D)) for v in AUX_VOCABS]
    p['layers'] = []
    for _ in range(NLAYERS):
        p['layers'].append(dict(
            ln1_g=jnp.ones((1, D), jnp.float32), ln1_b=jnp.zeros((1, D), jnp.float32),
            wqkv=nrm((D, 3 * D), dtype=bf16), bqkv=jnp.zeros((1, 3 * D), jnp.float32),
            wo=nrm((D, D), dtype=bf16), bo=jnp.zeros((1, D), jnp.float32),
            ln2_g=jnp.ones((1, D), jnp.float32), ln2_b=jnp.zeros((1, D), jnp.float32),
            w1=nrm((D, FF), dtype=bf16), b1=jnp.zeros((1, FF), jnp.float32),
            w2=nrm((FF, D), dtype=bf16), b2=jnp.zeros((1, D), jnp.float32),
        ))
    p['mu_w'] = nrm((2 * D,))
    p['mu_b'] = jnp.zeros((), jnp.float32)
    p['gene_bias'] = nrm((GENE_VOCAB,), 0.01)
    p['gid_w1'] = nrm((D, GENE_HEAD_HIDDEN), dtype=bf16)
    p['gid_b1'] = jnp.zeros((1, GENE_HEAD_HIDDEN), jnp.float32)
    p['gid_w2'] = nrm((GENE_HEAD_HIDDEN, GENE_VOCAB), dtype=bf16)
    p['gid_b2'] = jnp.zeros((1, GENE_VOCAB), jnp.float32)
    return p


# ---------------- forward ----------------
def forward(params, gene_tokens, gene_counts, aux_tokens, embed=True):
    Bb, Ss = gene_tokens.shape
    Aa = aux_tokens.shape[1]
    Ll = Aa + Ss

    # right-shift genes / counts
    rs_tokens = jnp.concatenate(
        [jnp.full((Bb, 1), START_IDX, gene_tokens.dtype), gene_tokens[:, :-1]], axis=1)
    rs_counts = jnp.concatenate(
        [jnp.ones((Bb, 1), gene_counts.dtype), gene_counts[:, :-1]], axis=1)

    # PretrainedEmbeddings (frozen, row-normalized at init) + linear projection.
    # Tiny (.., 16)x(16, 32) matmul: kept in plain XLA per perf review.
    emb_tbl = params['emb_matrix']
    all_tok = jnp.concatenate([rs_tokens, gene_tokens], axis=1)       # (B, 2S)
    e_all = emb_tbl[all_tok]                                          # (B, 2S, EMB_IN)
    proj = (jnp.dot(e_all.astype(jnp.bfloat16), params['emb_proj_w'],
                    preferred_element_type=jnp.float32) + params['emb_proj_b'])
    rs_gene_emb = proj[:, :Ss, :]
    gene_emb = proj[:, Ss:, :]

    # aux embeddings
    aux_emb = jnp.stack(
        [params['aux_emb'][i][aux_tokens[:, i]] for i in range(Aa)], axis=1)

    x = jnp.concatenate([aux_emb, rs_gene_emb], axis=1)               # (B, L, D)
    rs_counts_full = jnp.concatenate(
        [jnp.ones((Bb, Aa), rs_counts.dtype), rs_counts], axis=1)     # (B, L)

    # pad mask (True = keep)
    gene_pad = rs_tokens == PAD_IDX
    aux_pad = jnp.stack([aux_tokens == pid for pid in AUX_PAD_IDS], axis=-1).any(-1)
    keep_mask = ~jnp.concatenate([aux_pad, gene_pad], axis=1)         # (B, L)

    lc3 = jnp.log1p(rs_counts_full + EPS).astype(jnp.float32).reshape(Bb, 1, Ll)
    keep3 = keep_mask.astype(jnp.float32).reshape(Bb, 1, Ll)

    head = (params['gid_w1'], params['gid_b1'], params['gid_w2'], params['gid_b2'])

    # TODO(synk): TranscriptEncoder internals (pre/post-LN order, activation,
    # attn_bias / fw_bias handling) are not in the reference module; a standard
    # pre-LN flex-attention transformer block is used (fully fused per layer).
    x2 = x.reshape(Bb * Ll, D).astype(jnp.bfloat16)   # bf16 residual stream
    logit_full = None
    for li, lp in enumerate(params['layers']):
        last = li == len(params['layers']) - 1
        if last:
            x2, logit_full = transformer_layer(x2, lc3, keep3, lp, embed, head=head)
        else:
            x2 = transformer_layer(x2, lc3, keep3, lp, embed)

    x3 = x2.reshape(Bb, Ll, D).astype(jnp.float32)
    gene_output = x3[:, Aa:, :]                  # (B, S, D)
    gene_keep = keep_mask[:, Aa:]

    result = {}
    if embed:
        denom = jnp.maximum(gene_keep.sum(1, keepdims=True).astype(jnp.float32), 1.0)
        result['cell_embeddings'] = (gene_output * gene_keep[..., None]).sum(1) / denom
        result['gene_embeddings'] = gene_output

    result['input_gene_token_indices'] = jnp.concatenate(
        [gene_tokens[:, :-1], jnp.full((Bb, 1), END_IDX, gene_tokens.dtype)], axis=1)
    result['input_counts'] = jnp.concatenate(
        [gene_counts[:, :-1], jnp.ones((Bb, 1), gene_counts.dtype)], axis=1)

    # CountDecoderHead (softmax link): tiny (2D -> 1) reduction + softmax, XLA.
    # TODO(synk): CountDecoderHead internals are not in the reference module.
    conditioned = jnp.concatenate([gene_output, gene_emb], axis=-1)   # (B, S, 2D)
    logit = jnp.einsum('bsd,d->bs', conditioned, params['mu_w']) + params['mu_b']
    logit = logit + params['gene_bias'][gene_tokens]
    float_pad = jnp.where(gene_tokens == PAD_IDX, -1e30, 0.0)  # finite: no NaN
    mu = jax.nn.softmax(logit + float_pad, axis=1)
    mu = mu * gene_counts.sum(axis=1, keepdims=True)            # softmax link
    result['mu'] = mu

    result['mask'] = gene_tokens == PAD_IDX      # ~(~pad_mask)

    # gene-id head MLP: fused into the last layer's kernel epilogue above.
    result['gene_logit'] = logit_full.reshape(Bb, Ll, GENE_VOCAB)[:, Aa:, :]
    return result


if __name__ == "__main__":
    key = jax.random.PRNGKey(0)
    kp, kt, kc, ka = jax.random.split(key, 4)
    params = init_params(kp)

    gene_tokens = jax.random.randint(kt, (B, S), 7, GENE_VOCAB, dtype=jnp.int32)
    gene_tokens = gene_tokens.at[0, -2:].set(PAD_IDX)          # some padding
    gene_counts = jax.random.randint(kc, (B, S), 1, 10).astype(jnp.float32)
    gene_counts = gene_counts * (gene_tokens != PAD_IDX).astype(jnp.float32)
    aux_tokens = jax.random.randint(ka, (B, A), 1, min(AUX_VOCABS), dtype=jnp.int32)

    fwd = jax.jit(functools.partial(forward, embed=True))
    out = fwd(params, gene_tokens, gene_counts, aux_tokens)
    jax.block_until_ready(out)

    assert out['mu'].shape == (B, S)
    assert out['gene_logit'].shape == (B, S, GENE_VOCAB)
    assert out['cell_embeddings'].shape == (B, D)
    assert out['gene_embeddings'].shape == (B, S, D)
    assert bool(jnp.isfinite(out['mu']).all())
    assert bool(jnp.isfinite(out['gene_logit']).all())
    assert bool(jnp.isfinite(out['cell_embeddings']).all())
    print("KERNEL_OK")
</pallas_src>

<mosaic_0001>
module attributes {stable_mosaic.version = 11 : i64} {
  func.func @_layer_kernel(%arg0: i32, %arg1: memref<16x32xbf16, #tpu.memory_space<vmem>>, %arg2: memref<2x1x8xf32, #tpu.memory_space<vmem>>, %arg3: memref<2x1x8xf32, #tpu.memory_space<vmem>>, %arg4: memref<1x32xf32, #tpu.memory_space<vmem>>, %arg5: memref<1x32xf32, #tpu.memory_space<vmem>>, %arg6: memref<32x96xbf16, #tpu.memory_space<vmem>>, %arg7: memref<1x96xf32, #tpu.memory_space<vmem>>, %arg8: memref<32x32xbf16, #tpu.memory_space<vmem>>, %arg9: memref<1x32xf32, #tpu.memory_space<vmem>>, %arg10: memref<1x32xf32, #tpu.memory_space<vmem>>, %arg11: memref<1x32xf32, #tpu.memory_space<vmem>>, %arg12: memref<32x64xbf16, #tpu.memory_space<vmem>>, %arg13: memref<1x64xf32, #tpu.memory_space<vmem>>, %arg14: memref<64x32xbf16, #tpu.memory_space<vmem>>, %arg15: memref<1x32xf32, #tpu.memory_space<vmem>>, %arg16: memref<16x32xbf16, #tpu.memory_space<vmem>>) attributes {dimension_semantics = [#tpu.dimension_semantics<arbitrary>], iteration_bounds = array<i64: 1>, scalar_prefetch = 0 : i64, scratch_operands = 0 : i64, tpu.core_type = #tpu.core_type<tc>, window_params = [{pipeline_mode = #tpu.pipeline_mode<synchronous>, transform_indices = @transform_0, window_bounds = array<i64: 16, 32>}, {pipeline_mode = #tpu.pipeline_mode<synchronous>, transform_indices = @transform_1, window_bounds = array<i64: 2, 1, 8>}, {pipeline_mode = #tpu.pipeline_mode<synchronous>, transform_indices = @transform_2, window_bounds = array<i64: 2, 1, 8>}, {pipeline_mode = #tpu.pipeline_mode<synchronous>, transform_indices = @transform_3, window_bounds = array<i64: 1, 32>}, {pipeline_mode = #tpu.pipeline_mode<synchronous>, transform_indices = @transform_4, window_bounds = array<i64: 1, 32>}, {pipeline_mode = #tpu.pipeline_mode<synchronous>, transform_indices = @transform_5, window_bounds = array<i64: 32, 96>}, {pipeline_mode = #tpu.pipeline_mode<synchronous>, transform_indices = @transform_6, window_bounds = array<i64: 1, 96>}, {pipeline_mode = #tpu.pipeline_mode<synchronous>, transform_indices = @transform_7, window_bounds = array<i64: 32, 32>}, {pipeline_mode = #tpu.pipeline_mode<synchronous>, transform_indices = @transform_8, window_bounds = array<i64: 1, 32>}, {pipeline_mode = #tpu.pipeline_mode<synchronous>, transform_indices = @transform_9, window_bounds = array<i64: 1, 32>}, {pipeline_mode = #tpu.pipeline_mode<synchronous>, transform_indices = @transform_10, window_bounds = array<i64: 1, 32>}, {pipeline_mode = #tpu.pipeline_mode<synchronous>, transform_indices = @transform_11, window_bounds = array<i64: 32, 64>}, {pipeline_mode = #tpu.pipeline_mode<synchronous>, transform_indices = @transform_12, window_bounds = array<i64: 1, 64>}, {pipeline_mode = #tpu.pipeline_mode<synchronous>, transform_indices = @transform_13, window_bounds = array<i64: 64, 32>}, {pipeline_mode = #tpu.pipeline_mode<synchronous>, transform_indices = @transform_14, window_bounds = array<i64: 1, 32>}, {pipeline_mode = #tpu.pipeline_mode<synchronous>, transform_indices = @transform_15, window_bounds = array<i64: 16, 32>}]} {
    %c0 = arith.constant 0 : index
    %c0_0 = arith.constant 0 : index
    %0 = vector.load %arg1[%c0, %c0_0] : memref<16x32xbf16, #tpu.memory_space<vmem>>, vector<16x32xbf16>
    %1 = arith.extf %0 : vector<16x32xbf16> to vector<16x32xf32>
    %cst = arith.constant dense<0.000000e+00> : vector<16xf32>
    %2 = vector.multi_reduction <add>, %1, %cst [1] : vector<16x32xf32> to vector<16xf32>
    %3 = vector.shape_cast %2 : vector<16xf32> to vector<16x1xf32>
    %cst_1 = arith.constant 3.200000e+01 : f32
    %4 = vector.broadcast %cst_1 : f32 to vector<16x1xf32>
    %5 = arith.divf %3, %4 : vector<16x1xf32>
    %6 = vector.broadcast %5 : vector<16x1xf32> to vector<16x32xf32>
    %7 = arith.subf %1, %6 : vector<16x32xf32>
    %8 = vector.broadcast %5 : vector<16x1xf32> to vector<16x32xf32>
    %9 = arith.subf %1, %8 : vector<16x32xf32>
    %10 = arith.mulf %7, %9 : vector<16x32xf32>
    %cst_2 = arith.constant dense<0.000000e+00> : vector<16xf32>
    %11 = vector.multi_reduction <add>, %10, %cst_2 [1] : vector<16x32xf32> to vector<16xf32>
    %12 = vector.shape_cast %11 : vector<16xf32> to vector<16x1xf32>
    %cst_3 = arith.constant 3.200000e+01 : f32
    %13 = vector.broadcast %cst_3 : f32 to vector<16x1xf32>
    %14 = arith.divf %12, %13 : vector<16x1xf32>
    %15 = vector.broadcast %5 : vector<16x1xf32> to vector<16x32xf32>
    %16 = arith.subf %1, %15 : vector<16x32xf32>
    %cst_4 = arith.constant 9.99999974E-6 : f32
    %17 = vector.broadcast %cst_4 : f32 to vector<16x1xf32>
    %18 = arith.addf %14, %17 : vector<16x1xf32>
    %19 = math.rsqrt %18 : vector<16x1xf32>
    %20 = vector.broadcast %19 : vector<16x1xf32> to vector<16x32xf32>
    %21 = arith.mulf %16, %20 : vector<16x32xf32>
    %c0_5 = arith.constant 0 : index
    %c0_6 = arith.constant 0 : index
    %22 = vector.load %arg4[%c0_5, %c0_6] : memref<1x32xf32, #tpu.memory_space<vmem>>, vector<1x32xf32>
    %23 = vector.broadcast %22 : vector<1x32xf32> to vector<16x32xf32>
    %24 = arith.mulf %21, %23 : vector<16x32xf32>
    %c0_7 = arith.constant 0 : index
    %c0_8 = arith.constant 0 : index
    %25 = vector.load %arg5[%c0_7, %c0_8] : memref<1x32xf32, #tpu.memory_space<vmem>>, vector<1x32xf32>
    %26 = vector.broadcast %25 : vector<1x32xf32> to vector<16x32xf32>
    %27 = arith.addf %24, %26 : vector<16x32xf32>
    %28 = arith.truncf %27 : vector<16x32xf32> to vector<16x32xbf16>
    %c0_9 = arith.constant 0 : index
    %c0_10 = arith.constant 0 : index
    %29 = vector.load %arg6[%c0_9, %c0_10] : memref<32x96xbf16, #tpu.memory_space<vmem>>, vector<32x96xbf16>
    %cst_11 = arith.constant dense<0.000000e+00> : vector<16x96xf32>
    %30 = tpu.matmul %28, %29, %cst_11 {dimension_numbers = #tpu.dot_dimension_numbers<[1], [0], [0], [1], [0, 0, 1, 1], [], []>} : vector<16x32xbf16>, vector<32x96xbf16>, vector<16x96xf32> -> vector<16x96xf32>
    %c0_12 = arith.constant 0 : index
    %c0_13 = arith.constant 0 : index
    %31 = vector.load %arg7[%c0_12, %c0_13] : memref<1x96xf32, #tpu.memory_space<vmem>>, vector<1x96xf32>
    %32 = vector.broadcast %31 : vector<1x96xf32> to vector<16x96xf32>
    %33 = arith.addf %30, %32 : vector<16x96xf32>
    %34 = vector.shape_cast %33 : vector<16x96xf32> to vector<2x8x96xf32>
    %c0_14 = arith.constant 0 : index
    %c0_15 = arith.constant 0 : index
    %c0_16 = arith.constant 0 : index
    %35 = vector.load %arg2[%c0_14, %c0_15, %c0_16] : memref<2x1x8xf32, #tpu.memory_space<vmem>>, vector<2x1x8xf32>
    %c0_17 = arith.constant 0 : index
    %c0_18 = arith.constant 0 : index
    %c0_19 = arith.constant 0 : index
    %36 = vector.load %arg3[%c0_17, %c0_18, %c0_19] : memref<2x1x8xf32, #tpu.memory_space<vmem>>, vector<2x1x8xf32>
    %37 = tpu.iota {dimensions = array<i32: 0>} : vector<8x8xi32>
    %38 = tpu.iota {dimensions = array<i32: 1>} : vector<8x8xi32>
    %39 = arith.cmpi sge, %37, %38 : vector<8x8xi32>
    %40 = vector.shape_cast %39 : vector<8x8xi1> to vector<1x8x8xi1>
    %cst_20 = arith.constant 5.000000e-01 : f32
    %41 = vector.broadcast %cst_20 : f32 to vector<2x1x8xf32>
    %42 = arith.cmpf ogt, %36, %41 : vector<2x1x8xf32>
    %43 = vector.broadcast %40 : vector<1x8x8xi1> to vector<2x8x8xi1>
    %44 = vector.broadcast %42 : vector<2x1x8xi1> to vector<2x8x8xi1>
    %45 = arith.andi %43, %44 : vector<2x8x8xi1>
    %cst_21 = arith.constant 0.000000e+00 : f32
    %46 = vector.broadcast %cst_21 : f32 to vector<16x32xf32>
    %47 = vector.extract_strided_slice %34 {offsets = [0, 0, 0], sizes = [2, 8, 16], strides = [1, 1, 1]} : vector<2x8x96xf32> to vector<2x8x16xf32>
    %48 = arith.truncf %47 : vector<2x8x16xf32> to vector<2x8x16xbf16>
    %49 = vector.extract_strided_slice %34 {offsets = [0, 0, 32], sizes = [2, 8, 16], strides = [1, 1, 1]} : vector<2x8x96xf32> to vector<2x8x16xf32>
    %50 = arith.truncf %49 : vector<2x8x16xf32> to vector<2x8x16xbf16>
    %51 = vector.extract_strided_slice %34 {offsets = [0, 0, 64], sizes = [2, 8, 16], strides = [1, 1, 1]} : vector<2x8x96xf32> to vector<2x8x16xf32>
    %52 = arith.truncf %51 : vector<2x8x16xf32> to vector<2x8x16xbf16>
    "tpu.trace_start"() <{level = 10 : i32, message = "bqd,bkd->bqk"}> : () -> ()
    %cst_22 = arith.constant dense<0.000000e+00> : vector<2x8x8xf32>
    %53 = tpu.matmul %48, %50, %cst_22 {dimension_numbers = #tpu.dot_dimension_numbers<[2], [2], [1], [1], [0, 0, 0, 1, 1, 1], [0], [0]>} : vector<2x8x16xbf16>, vector<2x8x16xbf16>, vector<2x8x8xf32> -> vector<2x8x8xf32>
    "tpu.trace_stop"() : () -> ()
    %cst_23 = arith.constant 2.500000e-01 : f32
    %54 = vector.broadcast %cst_23 : f32 to vector<2x8x8xf32>
    %55 = arith.mulf %53, %54 : vector<2x8x8xf32>
    %56 = vector.broadcast %35 : vector<2x1x8xf32> to vector<2x8x8xf32>
    %57 = arith.addf %55, %56 : vector<2x8x8xf32>
    %cst_24 = arith.constant 0.0333333351 : f32
    %58 = vector.broadcast %cst_24 : f32 to vector<2x8x8xf32>
    %59 = arith.mulf %57, %58 : vector<2x8x8xf32>
    %60 = math.tanh %59 : vector<2x8x8xf32>
    %cst_25 = arith.constant 3.000000e+01 : f32
    %61 = vector.broadcast %cst_25 : f32 to vector<2x8x8xf32>
    %62 = arith.mulf %61, %60 : vector<2x8x8xf32>
    %cst_26 = arith.constant -1.000000e+30 : f32
    %63 = vector.broadcast %cst_26 : f32 to vector<2x8x8xf32>
    %64 = arith.select %45, %62, %63 : vector<2x8x8xi1>, vector<2x8x8xf32>
    %cst_27 = arith.constant dense<0xFF800000> : vector<2x8xf32>
    %65 = vector.multi_reduction <maximumf>, %64, %cst_27 [2] : vector<2x8x8xf32> to vector<2x8xf32>
    %66 = vector.shape_cast %65 : vector<2x8xf32> to vector<2x8x1xf32>
    %67 = vector.broadcast %66 : vector<2x8x1xf32> to vector<2x8x8xf32>
    %68 = arith.subf %64, %67 : vector<2x8x8xf32>
    %69 = math.exp %68 : vector<2x8x8xf32>
    %cst_28 = arith.constant dense<0.000000e+00> : vector<2x8xf32>
    %70 = vector.multi_reduction <add>, %69, %cst_28 [2] : vector<2x8x8xf32> to vector<2x8xf32>
    %71 = vector.shape_cast %70 : vector<2x8xf32> to vector<2x8x1xf32>
    %72 = vector.broadcast %71 : vector<2x8x1xf32> to vector<2x8x8xf32>
    %73 = arith.divf %69, %72 : vector<2x8x8xf32>
    %74 = arith.truncf %73 : vector<2x8x8xf32> to vector<2x8x8xbf16>
    "tpu.trace_start"() <{level = 10 : i32, message = "bqk,bkd->bqd"}> : () -> ()
    %cst_29 = arith.constant dense<0.000000e+00> : vector<2x8x16xf32>
    %75 = tpu.matmul %74, %52, %cst_29 {dimension_numbers = #tpu.dot_dimension_numbers<[2], [1], [1], [2], [0, 0, 0, 1, 1, 2], [0], [0]>} : vector<2x8x8xbf16>, vector<2x8x16xbf16>, vector<2x8x16xf32> -> vector<2x8x16xf32>
    "tpu.trace_stop"() : () -> ()
    %76 = vector.shape_cast %75 : vector<2x8x16xf32> to vector<16x16xf32>
    %77 = arith.truncf %76 : vector<16x16xf32> to vector<16x16xbf16>
    %c0_30 = arith.constant 0 : index
    %c0_31 = arith.constant 0 : index
    %78 = vector.load %arg8[%c0_30, %c0_31] : memref<32x32xbf16, #tpu.memory_space<vmem>>, vector<16x32xbf16>
    %cst_32 = arith.constant dense<0.000000e+00> : vector<16x32xf32>
    %79 = tpu.matmul %77, %78, %cst_32 {dimension_numbers = #tpu.dot_dimension_numbers<[1], [0], [0], [1], [0, 0, 1, 1], [], []>} : vector<16x16xbf16>, vector<16x32xbf16>, vector<16x32xf32> -> vector<16x32xf32>
    %80 = arith.addf %46, %79 : vector<16x32xf32>
    %81 = vector.extract_strided_slice %34 {offsets = [0, 0, 16], sizes = [2, 8, 16], strides = [1, 1, 1]} : vector<2x8x96xf32> to vector<2x8x16xf32>
    %82 = arith.truncf %81 : vector<2x8x16xf32> to vector<2x8x16xbf16>
    %83 = vector.extract_strided_slice %34 {offsets = [0, 0, 48], sizes = [2, 8, 16], strides = [1, 1, 1]} : vector<2x8x96xf32> to vector<2x8x16xf32>
    %84 = arith.truncf %83 : vector<2x8x16xf32> to vector<2x8x16xbf16>
    %85 = vector.extract_strided_slice %34 {offsets = [0, 0, 80], sizes = [2, 8, 16], strides = [1, 1, 1]} : vector<2x8x96xf32> to vector<2x8x16xf32>
    %86 = arith.truncf %85 : vector<2x8x16xf32> to vector<2x8x16xbf16>
    "tpu.trace_start"() <{level = 10 : i32, message = "bqd,bkd->bqk"}> : () -> ()
    %cst_33 = arith.constant dense<0.000000e+00> : vector<2x8x8xf32>
    %87 = tpu.matmul %82, %84, %cst_33 {dimension_numbers = #tpu.dot_dimension_numbers<[2], [2], [1], [1], [0, 0, 0, 1, 1, 1], [0], [0]>} : vector<2x8x16xbf16>, vector<2x8x16xbf16>, vector<2x8x8xf32> -> vector<2x8x8xf32>
    "tpu.trace_stop"() : () -> ()
    %cst_34 = arith.constant 2.500000e-01 : f32
    %88 = vector.broadcast %cst_34 : f32 to vector<2x8x8xf32>
    %89 = arith.mulf %87, %88 : vector<2x8x8xf32>
    %90 = vector.broadcast %35 : vector<2x1x8xf32> to vector<2x8x8xf32>
    %91 = arith.addf %89, %90 : vector<2x8x8xf32>
    %cst_35 = arith.constant 0.0333333351 : f32
    %92 = vector.broadcast %cst_35 : f32 to vector<2x8x8xf32>
    %93 = arith.mulf %91, %92 : vector<2x8x8xf32>
    %94 = math.tanh %93 : vector<2x8x8xf32>
    %cst_36 = arith.constant 3.000000e+01 : f32
    %95 = vector.broadcast %cst_36 : f32 to vector<2x8x8xf32>
    %96 = arith.mulf %95, %94 : vector<2x8x8xf32>
    %cst_37 = arith.constant -1.000000e+30 : f32
    %97 = vector.broadcast %cst_37 : f32 to vector<2x8x8xf32>
    %98 = arith.select %45, %96, %97 : vector<2x8x8xi1>, vector<2x8x8xf32>
    %cst_38 = arith.constant dense<0xFF800000> : vector<2x8xf32>
    %99 = vector.multi_reduction <maximumf>, %98, %cst_38 [2] : vector<2x8x8xf32> to vector<2x8xf32>
    %100 = vector.shape_cast %99 : vector<2x8xf32> to vector<2x8x1xf32>
    %101 = vector.broadcast %100 : vector<2x8x1xf32> to vector<2x8x8xf32>
    %102 = arith.subf %98, %101 : vector<2x8x8xf32>
    %103 = math.exp %102 : vector<2x8x8xf32>
    %cst_39 = arith.constant dense<0.000000e+00> : vector<2x8xf32>
    %104 = vector.multi_reduction <add>, %103, %cst_39 [2] : vector<2x8x8xf32> to vector<2x8xf32>
    %105 = vector.shape_cast %104 : vector<2x8xf32> to vector<2x8x1xf32>
    %106 = vector.broadcast %105 : vector<2x8x1xf32> to vector<2x8x8xf32>
    %107 = arith.divf %103, %106 : vector<2x8x8xf32>
    %108 = arith.truncf %107 : vector<2x8x8xf32> to vector<2x8x8xbf16>
    "tpu.trace_start"() <{level = 10 : i32, message = "bqk,bkd->bqd"}> : () -> ()
    %cst_40 = arith.constant dense<0.000000e+00> : vector<2x8x16xf32>
    %109 = tpu.matmul %108, %86, %cst_40 {dimension_numbers = #tpu.dot_dimension_numbers<[2], [1], [1], [2], [0, 0, 0, 1, 1, 2], [0], [0]>} : vector<2x8x8xbf16>, vector<2x8x16xbf16>, vector<2x8x16xf32> -> vector<2x8x16xf32>
    "tpu.trace_stop"() : () -> ()
    %110 = vector.shape_cast %109 : vector<2x8x16xf32> to vector<16x16xf32>
    %111 = arith.truncf %110 : vector<16x16xf32> to vector<16x16xbf16>
    %c16 = arith.constant 16 : index
    %c0_41 = arith.constant 0 : index
    %112 = vector.load %arg8[%c16, %c0_41] : memref<32x32xbf16, #tpu.memory_space<vmem>>, vector<16x32xbf16>
    %cst_42 = arith.constant dense<0.000000e+00> : vector<16x32xf32>
    %113 = tpu.matmul %111, %112, %cst_42 {dimension_numbers = #tpu.dot_dimension_numbers<[1], [0], [0], [1], [0, 0, 1, 1], [], []>} : vector<16x16xbf16>, vector<16x32xbf16>, vector<16x32xf32> -> vector<16x32xf32>
    %114 = arith.addf %80, %113 : vector<16x32xf32>
    %115 = arith.addf %1, %114 : vector<16x32xf32>
    %c0_43 = arith.constant 0 : index
    %c0_44 = arith.constant 0 : index
    %116 = vector.load %arg9[%c0_43, %c0_44] : memref<1x32xf32, #tpu.memory_space<vmem>>, vector<1x32xf32>
    %117 = vector.broadcast %116 : vector<1x32xf32> to vector<16x32xf32>
    %118 = arith.addf %115, %117 : vector<16x32xf32>
    %cst_45 = arith.constant dense<0.000000e+00> : vector<16xf32>
    %119 = vector.multi_reduction <add>, %118, %cst_45 [1] : vector<16x32xf32> to vector<16xf32>
    %120 = vector.shape_cast %119 : vector<16xf32> to vector<16x1xf32>
    %cst_46 = arith.constant 3.200000e+01 : f32
    %121 = vector.broadcast %cst_46 : f32 to vector<16x1xf32>
    %122 = arith.divf %120, %121 : vector<16x1xf32>
    %123 = vector.broadcast %122 : vector<16x1xf32> to vector<16x32xf32>
    %124 = arith.subf %118, %123 : vector<16x32xf32>
    %125 = vector.broadcast %122 : vector<16x1xf32> to vector<16x32xf32>
    %126 = arith.subf %118, %125 : vector<16x32xf32>
    %127 = arith.mulf %124, %126 : vector<16x32xf32>
    %cst_47 = arith.constant dense<0.000000e+00> : vector<16xf32>
    %128 = vector.multi_reduction <add>, %127, %cst_47 [1] : vector<16x32xf32> to vector<16xf32>
    %129 = vector.shape_cast %128 : vector<16xf32> to vector<16x1xf32>
    %cst_48 = arith.constant 3.200000e+01 : f32
    %130 = vector.broadcast %cst_48 : f32 to vector<16x1xf32>
    %131 = arith.divf %129, %130 : vector<16x1xf32>
    %132 = vector.broadcast %122 : vector<16x1xf32> to vector<16x32xf32>
    %133 = arith.subf %118, %132 : vector<16x32xf32>
    %cst_49 = arith.constant 9.99999974E-6 : f32
    %134 = vector.broadcast %cst_49 : f32 to vector<16x1xf32>
    %135 = arith.addf %131, %134 : vector<16x1xf32>
    %136 = math.rsqrt %135 : vector<16x1xf32>
    %137 = vector.broadcast %136 : vector<16x1xf32> to vector<16x32xf32>
    %138 = arith.mulf %133, %137 : vector<16x32xf32>
    %c0_50 = arith.constant 0 : index
    %c0_51 = arith.constant 0 : index
    %139 = vector.load %arg10[%c0_50, %c0_51] : memref<1x32xf32, #tpu.memory_space<vmem>>, vector<1x32xf32>
    %140 = vector.broadcast %139 : vector<1x32xf32> to vector<16x32xf32>
    %141 = arith.mulf %138, %140 : vector<16x32xf32>
    %c0_52 = arith.constant 0 : index
    %c0_53 = arith.constant 0 : index
    %142 = vector.load %arg11[%c0_52, %c0_53] : memref<1x32xf32, #tpu.memory_space<vmem>>, vector<1x32xf32>
    %143 = vector.broadcast %142 : vector<1x32xf32> to vector<16x32xf32>
    %144 = arith.addf %141, %143 : vector<16x32xf32>
    %145 = arith.truncf %144 : vector<16x32xf32> to vector<16x32xbf16>
    %c0_54 = arith.constant 0 : index
    %c0_55 = arith.constant 0 : index
    %146 = vector.load %arg12[%c0_54, %c0_55] : memref<32x64xbf16, #tpu.memory_space<vmem>>, vector<32x64xbf16>
    %cst_56 = arith.constant dense<0.000000e+00> : vector<16x64xf32>
    %147 = tpu.matmul %145, %146, %cst_56 {dimension_numbers = #tpu.dot_dimension_numbers<[1], [0], [0], [1], [0, 0, 1, 1], [], []>} : vector<16x32xbf16>, vector<32x64xbf16>, vector<16x64xf32> -> vector<16x64xf32>
    %c0_57 = arith.constant 0 : index
    %c0_58 = arith.constant 0 : index
    %148 = vector.load %arg13[%c0_57, %c0_58] : memref<1x64xf32, #tpu.memory_space<vmem>>, vector<1x64xf32>
    %149 = vector.broadcast %148 : vector<1x64xf32> to vector<16x64xf32>
    %150 = arith.addf %147, %149 : vector<16x64xf32>
    %151 = arith.mulf %150, %150 : vector<16x64xf32>
    %152 = arith.mulf %150, %151 : vector<16x64xf32>
    %cst_59 = arith.constant 4.471500e-02 : f32
    %153 = vector.broadcast %cst_59 : f32 to vector<16x64xf32>
    %154 = arith.mulf %153, %152 : vector<16x64xf32>
    %155 = arith.addf %150, %154 : vector<16x64xf32>
    %cst_60 = arith.constant 0.797884583 : f32
    %156 = vector.broadcast %cst_60 : f32 to vector<16x64xf32>
    %157 = arith.mulf %156, %155 : vector<16x64xf32>
    %158 = math.tanh %157 : vector<16x64xf32>
    %cst_61 = arith.constant 1.000000e+00 : f32
    %159 = vector.broadcast %cst_61 : f32 to vector<16x64xf32>
    %160 = arith.addf %159, %158 : vector<16x64xf32>
    %cst_62 = arith.constant 5.000000e-01 : f32
    %161 = vector.broadcast %cst_62 : f32 to vector<16x64xf32>
    %162 = arith.mulf %161, %160 : vector<16x64xf32>
    %163 = arith.mulf %150, %162 : vector<16x64xf32>
    %164 = arith.truncf %163 : vector<16x64xf32> to vector<16x64xbf16>
    %c0_63 = arith.constant 0 : index
    %c0_64 = arith.constant 0 : index
    %165 = vector.load %arg14[%c0_63, %c0_64] : memref<64x32xbf16, #tpu.memory_space<vmem>>, vector<64x32xbf16>
    %cst_65 = arith.constant dense<0.000000e+00> : vector<16x32xf32>
    %166 = tpu.matmul %164, %165, %cst_65 {dimension_numbers = #tpu.dot_dimension_numbers<[1], [0], [0], [1], [0, 0, 1, 1], [], []>} : vector<16x64xbf16>, vector<64x32xbf16>, vector<16x32xf32> -> vector<16x32xf32>
    %c0_66 = arith.constant 0 : index
    %c0_67 = arith.constant 0 : index
    %167 = vector.load %arg15[%c0_66, %c0_67] : memref<1x32xf32, #tpu.memory_space<vmem>>, vector<1x32xf32>
    %168 = vector.broadcast %167 : vector<1x32xf32> to vector<16x32xf32>
    %169 = arith.addf %166, %168 : vector<16x32xf32>
    %170 = arith.addf %118, %169 : vector<16x32xf32>
    %171 = arith.truncf %170 : vector<16x32xf32> to vector<16x32xbf16>
    %c0_68 = arith.constant 0 : index
    %c0_69 = arith.constant 0 : index
    %172 = vector.load %arg16[%c0_68, %c0_69] : memref<16x32xbf16, #tpu.memory_space<vmem>>, vector<16x32xbf16>
    tpu.vector_store %arg16[%c0_68, %c0_69], %171 {strides = array<i32>} : memref<16x32xbf16, #tpu.memory_space<vmem>>, vector<16x32xbf16>,
    return
  }
  func.func @transform_0(%arg0: i32) -> (i32, i32) {
    %c0_i32 = arith.constant 0 : i32
    %c0_i32_0 = arith.constant 0 : i32
    %c0_i32_1 = arith.constant 0 : i32
    return %c0_i32, %c0_i32_0 : i32, i32
  }
  func.func @transform_1(%arg0: i32) -> (i32, i32, i32) {
    %c0_i32 = arith.constant 0 : i32
    %c0_i32_0 = arith.constant 0 : i32
    %c0_i32_1 = arith.constant 0 : i32
    %c0_i32_2 = arith.constant 0 : i32
    return %c0_i32, %c0_i32_0, %c0_i32_1 : i32, i32, i32
  }
  func.func @transform_2(%arg0: i32) -> (i32, i32, i32) {
    %c0_i32 = arith.constant 0 : i32
    %c0_i32_0 = arith.constant 0 : i32
    %c0_i32_1 = arith.constant 0 : i32
    %c0_i32_2 = arith.constant 0 : i32
    return %c0_i32, %c0_i32_0, %c0_i32_1 : i32, i32, i32
  }
  func.func @transform_3(%arg0: i32) -> (i32, i32) {
    %c0_i32 = arith.constant 0 : i32
    %c0_i32_0 = arith.constant 0 : i32
    %c0_i32_1 = arith.constant 0 : i32
    return %c0_i32, %c0_i32_0 : i32, i32
  }
  func.func @transform_4(%arg0: i32) -> (i32, i32) {
    %c0_i32 = arith.constant 0 : i32
    %c0_i32_0 = arith.constant 0 : i32
    %c0_i32_1 = arith.constant 0 : i32
    return %c0_i32, %c0_i32_0 : i32, i32
  }
  func.func @transform_5(%arg0: i32) -> (i32, i32) {
    %c0_i32 = arith.constant 0 : i32
    %c0_i32_0 = arith.constant 0 : i32
    %c0_i32_1 = arith.constant 0 : i32
    return %c0_i32, %c0_i32_0 : i32, i32
  }
  func.func @transform_6(%arg0: i32) -> (i32, i32) {
    %c0_i32 = arith.constant 0 : i32
    %c0_i32_0 = arith.constant 0 : i32
    %c0_i32_1 = arith.constant 0 : i32
    return %c0_i32, %c0_i32_0 : i32, i32
  }
  func.func @transform_7(%arg0: i32) -> (i32, i32) {
    %c0_i32 = arith.constant 0 : i32
    %c0_i32_0 = arith.constant 0 : i32
    %c0_i32_1 = arith.constant 0 : i32
    return %c0_i32, %c0_i32_0 : i32, i32
  }
  func.func @transform_8(%arg0: i32) -> (i32, i32) {
    %c0_i32 = arith.constant 0 : i32
    %c0_i32_0 = arith.constant 0 : i32
    %c0_i32_1 = arith.constant 0 : i32
    return %c0_i32, %c0_i32_0 : i32, i32
  }
  func.func @transform_9(%arg0: i32) -> (i32, i32) {
    %c0_i32 = arith.constant 0 : i32
    %c0_i32_0 = arith.constant 0 : i32
    %c0_i32_1 = arith.constant 0 : i32
    return %c0_i32, %c0_i32_0 : i32, i32
  }
  func.func @transform_10(%arg0: i32) -> (i32, i32) {
    %c0_i32 = arith.constant 0 : i32
    %c0_i32_0 = arith.constant 0 : i32
    %c0_i32_1 = arith.constant 0 : i32
    return %c0_i32, %c0_i32_0 : i32, i32
  }
  func.func @transform_11(%arg0: i32) -> (i32, i32) {
    %c0_i32 = arith.constant 0 : i32
    %c0_i32_0 = arith.constant 0 : i32
    %c0_i32_1 = arith.constant 0 : i32
    return %c0_i32, %c0_i32_0 : i32, i32
  }
  func.func @transform_12(%arg0: i32) -> (i32, i32) {
    %c0_i32 = arith.constant 0 : i32
    %c0_i32_0 = arith.constant 0 : i32
    %c0_i32_1 = arith.constant 0 : i32
    return %c0_i32, %c0_i32_0 : i32, i32
  }
  func.func @transform_13(%arg0: i32) -> (i32, i32) {
    %c0_i32 = arith.constant 0 : i32
    %c0_i32_0 = arith.constant 0 : i32
    %c0_i32_1 = arith.constant 0 : i32
    return %c0_i32, %c0_i32_0 : i32, i32
  }
  func.func @transform_14(%arg0: i32) -> (i32, i32) {
    %c0_i32 = arith.constant 0 : i32
    %c0_i32_0 = arith.constant 0 : i32
    %c0_i32_1 = arith.constant 0 : i32
    return %c0_i32, %c0_i32_0 : i32, i32
  }
  func.func @transform_15(%arg0: i32) -> (i32, i32) {
    %c0_i32 = arith.constant 0 : i32
    %c0_i32_0 = arith.constant 0 : i32
    %c0_i32_1 = arith.constant 0 : i32
    return %c0_i32, %c0_i32_0 : i32, i32
  }
}

module attributes {stable_mosaic.version = 11 : i64} {
  func.func @_layer_head_kernel(%arg0: i32, %arg1: memref<16x32xbf16, #tpu.memory_space<vmem>>, %arg2: memref<2x1x8xf32, #tpu.memory_space<vmem>>, %arg3: memref<2x1x8xf32, #tpu.memory_space<vmem>>, %arg4: memref<1x32xf32, #tpu.memory_space<vmem>>, %arg5: memref<1x32xf32, #tpu.memory_space<vmem>>, %arg6: memref<32x96xbf16, #tpu.memory_space<vmem>>, %arg7: memref<1x96xf32, #tpu.memory_space<vmem>>, %arg8: memref<32x32xbf16, #tpu.memory_space<vmem>>, %arg9: memref<1x32xf32, #tpu.memory_space<vmem>>, %arg10: memref<1x32xf32, #tpu.memory_space<vmem>>, %arg11: memref<1x32xf32, #tpu.memory_space<vmem>>, %arg12: memref<32x64xbf16, #tpu.memory_space<vmem>>, %arg13: memref<1x64xf32, #tpu.memory_space<vmem>>, %arg14: memref<64x32xbf16, #tpu.memory_space<vmem>>, %arg15: memref<1x32xf32, #tpu.memory_space<vmem>>, %arg16: memref<32x32xbf16, #tpu.memory_space<vmem>>, %arg17: memref<1x32xf32, #tpu.memory_space<vmem>>, %arg18: memref<32x16xbf16, #tpu.memory_space<vmem>>, %arg19: memref<1x16xf32, #tpu.memory_space<vmem>>, %arg20: memref<16x32xbf16, #tpu.memory_space<vmem>>, %arg21: memref<16x16xf32, #tpu.memory_space<vmem>>) attributes {dimension_semantics = [#tpu.dimension_semantics<arbitrary>], iteration_bounds = array<i64: 1>, scalar_prefetch = 0 : i64, scratch_operands = 0 : i64, tpu.core_type = #tpu.core_type<tc>, window_params = [{pipeline_mode = #tpu.pipeline_mode<synchronous>, transform_indices = @transform_0, window_bounds = array<i64: 16, 32>}, {pipeline_mode = #tpu.pipeline_mode<synchronous>, transform_indices = @transform_1, window_bounds = array<i64: 2, 1, 8>}, {pipeline_mode = #tpu.pipeline_mode<synchronous>, transform_indices = @transform_2, window_bounds = array<i64: 2, 1, 8>}, {pipeline_mode = #tpu.pipeline_mode<synchronous>, transform_indices = @transform_3, window_bounds = array<i64: 1, 32>}, {pipeline_mode = #tpu.pipeline_mode<synchronous>, transform_indices = @transform_4, window_bounds = array<i64: 1, 32>}, {pipeline_mode = #tpu.pipeline_mode<synchronous>, transform_indices = @transform_5, window_bounds = array<i64: 32, 96>}, {pipeline_mode = #tpu.pipeline_mode<synchronous>, transform_indices = @transform_6, window_bounds = array<i64: 1, 96>}, {pipeline_mode = #tpu.pipeline_mode<synchronous>, transform_indices = @transform_7, window_bounds = array<i64: 32, 32>}, {pipeline_mode = #tpu.pipeline_mode<synchronous>, transform_indices = @transform_8, window_bounds = array<i64: 1, 32>}, {pipeline_mode = #tpu.pipeline_mode<synchronous>, transform_indices = @transform_9, window_bounds = array<i64: 1, 32>}, {pipeline_mode = #tpu.pipeline_mode<synchronous>, transform_indices = @transform_10, window_bounds = array<i64: 1, 32>}, {pipeline_mode = #tpu.pipeline_mode<synchronous>, transform_indices = @transform_11, window_bounds = array<i64: 32, 64>}, {pipeline_mode = #tpu.pipeline_mode<synchronous>, transform_indices = @transform_12, window_bounds = array<i64: 1, 64>}, {pipeline_mode = #tpu.pipeline_mode<synchronous>, transform_indices = @transform_13, window_bounds = array<i64: 64, 32>}, {pipeline_mode = #tpu.pipeline_mode<synchronous>, transform_indices = @transform_14, window_bounds = array<i64: 1, 32>}, {pipeline_mode = #tpu.pipeline_mode<synchronous>, transform_indices = @transform_15, window_bounds = array<i64: 32, 32>}, {pipeline_mode = #tpu.pipeline_mode<synchronous>, transform_indices = @transform_16, window_bounds = array<i64: 1, 32>}, {pipeline_mode = #tpu.pipeline_mode<synchronous>, transform_indices = @transform_17, window_bounds = array<i64: 32, 16>}, {pipeline_mode = #tpu.pipeline_mode<synchronous>, transform_indices = @transform_18, window_bounds = array<i64: 1, 16>}, {pipeline_mode = #tpu.pipeline_mode<synchronous>, transform_indices = @transform_19, window_bounds = array<i64: 16, 32>}, {pipeline_mode = #tpu.pipeline_mode<synchronous>, transform_indices = @transform_20, window_bounds = array<i64: 16, 16>}]} {
    %c0 = arith.constant 0 : index
    %c0_0 = arith.constant 0 : index
    %0 = vector.load %arg1[%c0, %c0_0] : memref<16x32xbf16, #tpu.memory_space<vmem>>, vector<16x32xbf16>
    %1 = arith.extf %0 : vector<16x32xbf16> to vector<16x32xf32>
    %cst = arith.constant dense<0.000000e+00> : vector<16xf32>
    %2 = vector.multi_reduction <add>, %1, %cst [1] : vector<16x32xf32> to vector<16xf32>
    %3 = vector.shape_cast %2 : vector<16xf32> to vector<16x1xf32>
    %cst_1 = arith.constant 3.200000e+01 : f32
    %4 = vector.broadcast %cst_1 : f32 to vector<16x1xf32>
    %5 = arith.divf %3, %4 : vector<16x1xf32>
    %6 = vector.broadcast %5 : vector<16x1xf32> to vector<16x32xf32>
    %7 = arith.subf %1, %6 : vector<16x32xf32>
    %8 = vector.broadcast %5 : vector<16x1xf32> to vector<16x32xf32>
    %9 = arith.subf %1, %8 : vector<16x32xf32>
    %10 = arith.mulf %7, %9 : vector<16x32xf32>
    %cst_2 = arith.constant dense<0.000000e+00> : vector<16xf32>
    %11 = vector.multi_reduction <add>, %10, %cst_2 [1] : vector<16x32xf32> to vector<16xf32>
    %12 = vector.shape_cast %11 : vector<16xf32> to vector<16x1xf32>
    %cst_3 = arith.constant 3.200000e+01 : f32
    %13 = vector.broadcast %cst_3 : f32 to vector<16x1xf32>
    %14 = arith.divf %12, %13 : vector<16x1xf32>
    %15 = vector.broadcast %5 : vector<16x1xf32> to vector<16x32xf32>
    %16 = arith.subf %1, %15 : vector<16x32xf32>
    %cst_4 = arith.constant 9.99999974E-6 : f32
    %17 = vector.broadcast %cst_4 : f32 to vector<16x1xf32>
    %18 = arith.addf %14, %17 : vector<16x1xf32>
    %19 = math.rsqrt %18 : vector<16x1xf32>
    %20 = vector.broadcast %19 : vector<16x1xf32> to vector<16x32xf32>
    %21 = arith.mulf %16, %20 : vector<16x32xf32>
    %c0_5 = arith.constant 0 : index
    %c0_6 = arith.constant 0 : index
    %22 = vector.load %arg4[%c0_5, %c0_6] : memref<1x32xf32, #tpu.memory_space<vmem>>, vector<1x32xf32>
    %23 = vector.broadcast %22 : vector<1x32xf32> to vector<16x32xf32>
    %24 = arith.mulf %21, %23 : vector<16x32xf32>
    %c0_7 = arith.constant 0 : index
    %c0_8 = arith.constant 0 : index
    %25 = vector.load %arg5[%c0_7, %c0_8] : memref<1x32xf32, #tpu.memory_space<vmem>>, vector<1x32xf32>
    %26 = vector.broadcast %25 : vector<1x32xf32> to vector<16x32xf32>
    %27 = arith.addf %24, %26 : vector<16x32xf32>
    %28 = arith.truncf %27 : vector<16x32xf32> to vector<16x32xbf16>
    %c0_9 = arith.constant 0 : index
    %c0_10 = arith.constant 0 : index
    %29 = vector.load %arg6[%c0_9, %c0_10] : memref<32x96xbf16, #tpu.memory_space<vmem>>, vector<32x96xbf16>
    %cst_11 = arith.constant dense<0.000000e+00> : vector<16x96xf32>
    %30 = tpu.matmul %28, %29, %cst_11 {dimension_numbers = #tpu.dot_dimension_numbers<[1], [0], [0], [1], [0, 0, 1, 1], [], []>} : vector<16x32xbf16>, vector<32x96xbf16>, vector<16x96xf32> -> vector<16x96xf32>
    %c0_12 = arith.constant 0 : index
    %c0_13 = arith.constant 0 : index
    %31 = vector.load %arg7[%c0_12, %c0_13] : memref<1x96xf32, #tpu.memory_space<vmem>>, vector<1x96xf32>
    %32 = vector.broadcast %31 : vector<1x96xf32> to vector<16x96xf32>
    %33 = arith.addf %30, %32 : vector<16x96xf32>
    %34 = vector.shape_cast %33 : vector<16x96xf32> to vector<2x8x96xf32>
    %c0_14 = arith.constant 0 : index
    %c0_15 = arith.constant 0 : index
    %c0_16 = arith.constant 0 : index
    %35 = vector.load %arg2[%c0_14, %c0_15, %c0_16] : memref<2x1x8xf32, #tpu.memory_space<vmem>>, vector<2x1x8xf32>
    %c0_17 = arith.constant 0 : index
    %c0_18 = arith.constant 0 : index
    %c0_19 = arith.constant 0 : index
    %36 = vector.load %arg3[%c0_17, %c0_18, %c0_19] : memref<2x1x8xf32, #tpu.memory_space<vmem>>, vector<2x1x8xf32>
    %37 = tpu.iota {dimensions = array<i32: 0>} : vector<8x8xi32>
    %38 = tpu.iota {dimensions = array<i32: 1>} : vector<8x8xi32>
    %39 = arith.cmpi sge, %37, %38 : vector<8x8xi32>
    %40 = vector.shape_cast %39 : vector<8x8xi1> to vector<1x8x8xi1>
    %cst_20 = arith.constant 5.000000e-01 : f32
    %41 = vector.broadcast %cst_20 : f32 to vector<2x1x8xf32>
    %42 = arith.cmpf ogt, %36, %41 : vector<2x1x8xf32>
    %43 = vector.broadcast %40 : vector<1x8x8xi1> to vector<2x8x8xi1>
    %44 = vector.broadcast %42 : vector<2x1x8xi1> to vector<2x8x8xi1>
    %45 = arith.andi %43, %44 : vector<2x8x8xi1>
    %cst_21 = arith.constant 0.000000e+00 : f32
    %46 = vector.broadcast %cst_21 : f32 to vector<16x32xf32>
    %47 = vector.extract_strided_slice %34 {offsets = [0, 0, 0], sizes = [2, 8, 16], strides = [1, 1, 1]} : vector<2x8x96xf32> to vector<2x8x16xf32>
    %48 = arith.truncf %47 : vector<2x8x16xf32> to vector<2x8x16xbf16>
    %49 = vector.extract_strided_slice %34 {offsets = [0, 0, 32], sizes = [2, 8, 16], strides = [1, 1, 1]} : vector<2x8x96xf32> to vector<2x8x16xf32>
    %50 = arith.truncf %49 : vector<2x8x16xf32> to vector<2x8x16xbf16>
    %51 = vector.extract_strided_slice %34 {offsets = [0, 0, 64], sizes = [2, 8, 16], strides = [1, 1, 1]} : vector<2x8x96xf32> to vector<2x8x16xf32>
    %52 = arith.truncf %51 : vector<2x8x16xf32> to vector<2x8x16xbf16>
    "tpu.trace_start"() <{level = 10 : i32, message = "bqd,bkd->bqk"}> : () -> ()
    %cst_22 = arith.constant dense<0.000000e+00> : vector<2x8x8xf32>
    %53 = tpu.matmul %48, %50, %cst_22 {dimension_numbers = #tpu.dot_dimension_numbers<[2], [2], [1], [1], [0, 0, 0, 1, 1, 1], [0], [0]>} : vector<2x8x16xbf16>, vector<2x8x16xbf16>, vector<2x8x8xf32> -> vector<2x8x8xf32>
    "tpu.trace_stop"() : () -> ()
    %cst_23 = arith.constant 2.500000e-01 : f32
    %54 = vector.broadcast %cst_23 : f32 to vector<2x8x8xf32>
    %55 = arith.mulf %53, %54 : vector<2x8x8xf32>
    %56 = vector.broadcast %35 : vector<2x1x8xf32> to vector<2x8x8xf32>
    %57 = arith.addf %55, %56 : vector<2x8x8xf32>
    %cst_24 = arith.constant 0.0333333351 : f32
    %58 = vector.broadcast %cst_24 : f32 to vector<2x8x8xf32>
    %59 = arith.mulf %57, %58 : vector<2x8x8xf32>
    %60 = math.tanh %59 : vector<2x8x8xf32>
    %cst_25 = arith.constant 3.000000e+01 : f32
    %61 = vector.broadcast %cst_25 : f32 to vector<2x8x8xf32>
    %62 = arith.mulf %61, %60 : vector<2x8x8xf32>
    %cst_26 = arith.constant -1.000000e+30 : f32
    %63 = vector.broadcast %cst_26 : f32 to vector<2x8x8xf32>
    %64 = arith.select %45, %62, %63 : vector<2x8x8xi1>, vector<2x8x8xf32>
    %cst_27 = arith.constant dense<0xFF800000> : vector<2x8xf32>
    %65 = vector.multi_reduction <maximumf>, %64, %cst_27 [2] : vector<2x8x8xf32> to vector<2x8xf32>
    %66 = vector.shape_cast %65 : vector<2x8xf32> to vector<2x8x1xf32>
    %67 = vector.broadcast %66 : vector<2x8x1xf32> to vector<2x8x8xf32>
    %68 = arith.subf %64, %67 : vector<2x8x8xf32>
    %69 = math.exp %68 : vector<2x8x8xf32>
    %cst_28 = arith.constant dense<0.000000e+00> : vector<2x8xf32>
    %70 = vector.multi_reduction <add>, %69, %cst_28 [2] : vector<2x8x8xf32> to vector<2x8xf32>
    %71 = vector.shape_cast %70 : vector<2x8xf32> to vector<2x8x1xf32>
    %72 = vector.broadcast %71 : vector<2x8x1xf32> to vector<2x8x8xf32>
    %73 = arith.divf %69, %72 : vector<2x8x8xf32>
    %74 = arith.truncf %73 : vector<2x8x8xf32> to vector<2x8x8xbf16>
    "tpu.trace_start"() <{level = 10 : i32, message = "bqk,bkd->bqd"}> : () -> ()
    %cst_29 = arith.constant dense<0.000000e+00> : vector<2x8x16xf32>
    %75 = tpu.matmul %74, %52, %cst_29 {dimension_numbers = #tpu.dot_dimension_numbers<[2], [1], [1], [2], [0, 0, 0, 1, 1, 2], [0], [0]>} : vector<2x8x8xbf16>, vector<2x8x16xbf16>, vector<2x8x16xf32> -> vector<2x8x16xf32>
    "tpu.trace_stop"() : () -> ()
    %76 = vector.shape_cast %75 : vector<2x8x16xf32> to vector<16x16xf32>
    %77 = arith.truncf %76 : vector<16x16xf32> to vector<16x16xbf16>
    %c0_30 = arith.constant 0 : index
    %c0_31 = arith.constant 0 : index
    %78 = vector.load %arg8[%c0_30, %c0_31] : memref<32x32xbf16, #tpu.memory_space<vmem>>, vector<16x32xbf16>
    %cst_32 = arith.constant dense<0.000000e+00> : vector<16x32xf32>
    %79 = tpu.matmul %77, %78, %cst_32 {dimension_numbers = #tpu.dot_dimension_numbers<[1], [0], [0], [1], [0, 0, 1, 1], [], []>} : vector<16x16xbf16>, vector<16x32xbf16>, vector<16x32xf32> -> vector<16x32xf32>
    %80 = arith.addf %46, %79 : vector<16x32xf32>
    %81 = vector.extract_strided_slice %34 {offsets = [0, 0, 16], sizes = [2, 8, 16], strides = [1, 1, 1]} : vector<2x8x96xf32> to vector<2x8x16xf32>
    %82 = arith.truncf %81 : vector<2x8x16xf32> to vector<2x8x16xbf16>
    %83 = vector.extract_strided_slice %34 {offsets = [0, 0, 48], sizes = [2, 8, 16], strides = [1, 1, 1]} : vector<2x8x96xf32> to vector<2x8x16xf32>
    %84 = arith.truncf %83 : vector<2x8x16xf32> to vector<2x8x16xbf16>
    %85 = vector.extract_strided_slice %34 {offsets = [0, 0, 80], sizes = [2, 8, 16], strides = [1, 1, 1]} : vector<2x8x96xf32> to vector<2x8x16xf32>
    %86 = arith.truncf %85 : vector<2x8x16xf32> to vector<2x8x16xbf16>
    "tpu.trace_start"() <{level = 10 : i32, message = "bqd,bkd->bqk"}> : () -> ()
    %cst_33 = arith.constant dense<0.000000e+00> : vector<2x8x8xf32>
    %87 = tpu.matmul %82, %84, %cst_33 {dimension_numbers = #tpu.dot_dimension_numbers<[2], [2], [1], [1], [0, 0, 0, 1, 1, 1], [0], [0]>} : vector<2x8x16xbf16>, vector<2x8x16xbf16>, vector<2x8x8xf32> -> vector<2x8x8xf32>
    "tpu.trace_stop"() : () -> ()
    %cst_34 = arith.constant 2.500000e-01 : f32
    %88 = vector.broadcast %cst_34 : f32 to vector<2x8x8xf32>
    %89 = arith.mulf %87, %88 : vector<2x8x8xf32>
    %90 = vector.broadcast %35 : vector<2x1x8xf32> to vector<2x8x8xf32>
    %91 = arith.addf %89, %90 : vector<2x8x8xf32>
    %cst_35 = arith.constant 0.0333333351 : f32
    %92 = vector.broadcast %cst_35 : f32 to vector<2x8x8xf32>
    %93 = arith.mulf %91, %92 : vector<2x8x8xf32>
    %94 = math.tanh %93 : vector<2x8x8xf32>
    %cst_36 = arith.constant 3.000000e+01 : f32
    %95 = vector.broadcast %cst_36 : f32 to vector<2x8x8xf32>
    %96 = arith.mulf %95, %94 : vector<2x8x8xf32>
    %cst_37 = arith.constant -1.000000e+30 : f32
    %97 = vector.broadcast %cst_37 : f32 to vector<2x8x8xf32>
    %98 = arith.select %45, %96, %97 : vector<2x8x8xi1>, vector<2x8x8xf32>
    %cst_38 = arith.constant dense<0xFF800000> : vector<2x8xf32>
    %99 = vector.multi_reduction <maximumf>, %98, %cst_38 [2] : vector<2x8x8xf32> to vector<2x8xf32>
    %100 = vector.shape_cast %99 : vector<2x8xf32> to vector<2x8x1xf32>
    %101 = vector.broadcast %100 : vector<2x8x1xf32> to vector<2x8x8xf32>
    %102 = arith.subf %98, %101 : vector<2x8x8xf32>
    %103 = math.exp %102 : vector<2x8x8xf32>
    %cst_39 = arith.constant dense<0.000000e+00> : vector<2x8xf32>
    %104 = vector.multi_reduction <add>, %103, %cst_39 [2] : vector<2x8x8xf32> to vector<2x8xf32>
    %105 = vector.shape_cast %104 : vector<2x8xf32> to vector<2x8x1xf32>
    %106 = vector.broadcast %105 : vector<2x8x1xf32> to vector<2x8x8xf32>
    %107 = arith.divf %103, %106 : vector<2x8x8xf32>
    %108 = arith.truncf %107 : vector<2x8x8xf32> to vector<2x8x8xbf16>
    "tpu.trace_start"() <{level = 10 : i32, message = "bqk,bkd->bqd"}> : () -> ()
    %cst_40 = arith.constant dense<0.000000e+00> : vector<2x8x16xf32>
    %109 = tpu.matmul %108, %86, %cst_40 {dimension_numbers = #tpu.dot_dimension_numbers<[2], [1], [1], [2], [0, 0, 0, 1, 1, 2], [0], [0]>} : vector<2x8x8xbf16>, vector<2x8x16xbf16>, vector<2x8x16xf32> -> vector<2x8x16xf32>
    "tpu.trace_stop"() : () -> ()
    %110 = vector.shape_cast %109 : vector<2x8x16xf32> to vector<16x16xf32>
    %111 = arith.truncf %110 : vector<16x16xf32> to vector<16x16xbf16>
    %c16 = arith.constant 16 : index
    %c0_41 = arith.constant 0 : index
    %112 = vector.load %arg8[%c16, %c0_41] : memref<32x32xbf16, #tpu.memory_space<vmem>>, vector<16x32xbf16>
    %cst_42 = arith.constant dense<0.000000e+00> : vector<16x32xf32>
    %113 = tpu.matmul %111, %112, %cst_42 {dimension_numbers = #tpu.dot_dimension_numbers<[1], [0], [0], [1], [0, 0, 1, 1], [], []>} : vector<16x16xbf16>, vector<16x32xbf16>, vector<16x32xf32> -> vector<16x32xf32>
    %114 = arith.addf %80, %113 : vector<16x32xf32>
    %115 = arith.addf %1, %114 : vector<16x32xf32>
    %c0_43 = arith.constant 0 : index
    %c0_44 = arith.constant 0 : index
    %116 = vector.load %arg9[%c0_43, %c0_44] : memref<1x32xf32, #tpu.memory_space<vmem>>, vector<1x32xf32>
    %117 = vector.broadcast %116 : vector<1x32xf32> to vector<16x32xf32>
    %118 = arith.addf %115, %117 : vector<16x32xf32>
    %cst_45 = arith.constant dense<0.000000e+00> : vector<16xf32>
    %119 = vector.multi_reduction <add>, %118, %cst_45 [1] : vector<16x32xf32> to vector<16xf32>
    %120 = vector.shape_cast %119 : vector<16xf32> to vector<16x1xf32>
    %cst_46 = arith.constant 3.200000e+01 : f32
    %121 = vector.broadcast %cst_46 : f32 to vector<16x1xf32>
    %122 = arith.divf %120, %121 : vector<16x1xf32>
    %123 = vector.broadcast %122 : vector<16x1xf32> to vector<16x32xf32>
    %124 = arith.subf %118, %123 : vector<16x32xf32>
    %125 = vector.broadcast %122 : vector<16x1xf32> to vector<16x32xf32>
    %126 = arith.subf %118, %125 : vector<16x32xf32>
    %127 = arith.mulf %124, %126 : vector<16x32xf32>
    %cst_47 = arith.constant dense<0.000000e+00> : vector<16xf32>
    %128 = vector.multi_reduction <add>, %127, %cst_47 [1] : vector<16x32xf32> to vector<16xf32>
    %129 = vector.shape_cast %128 : vector<16xf32> to vector<16x1xf32>
    %cst_48 = arith.constant 3.200000e+01 : f32
    %130 = vector.broadcast %cst_48 : f32 to vector<16x1xf32>
    %131 = arith.divf %129, %130 : vector<16x1xf32>
    %132 = vector.broadcast %122 : vector<16x1xf32> to vector<16x32xf32>
    %133 = arith.subf %118, %132 : vector<16x32xf32>
    %cst_49 = arith.constant 9.99999974E-6 : f32
    %134 = vector.broadcast %cst_49 : f32 to vector<16x1xf32>
    %135 = arith.addf %131, %134 : vector<16x1xf32>
    %136 = math.rsqrt %135 : vector<16x1xf32>
    %137 = vector.broadcast %136 : vector<16x1xf32> to vector<16x32xf32>
    %138 = arith.mulf %133, %137 : vector<16x32xf32>
    %c0_50 = arith.constant 0 : index
    %c0_51 = arith.constant 0 : index
    %139 = vector.load %arg10[%c0_50, %c0_51] : memref<1x32xf32, #tpu.memory_space<vmem>>, vector<1x32xf32>
    %140 = vector.broadcast %139 : vector<1x32xf32> to vector<16x32xf32>
    %141 = arith.mulf %138, %140 : vector<16x32xf32>
    %c0_52 = arith.constant 0 : index
    %c0_53 = arith.constant 0 : index
    %142 = vector.load %arg11[%c0_52, %c0_53] : memref<1x32xf32, #tpu.memory_space<vmem>>, vector<1x32xf32>
    %143 = vector.broadcast %142 : vector<1x32xf32> to vector<16x32xf32>
    %144 = arith.addf %141, %143 : vector<16x32xf32>
    %145 = arith.truncf %144 : vector<16x32xf32> to vector<16x32xbf16>
    %c0_54 = arith.constant 0 : index
    %c0_55 = arith.constant 0 : index
    %146 = vector.load %arg12[%c0_54, %c0_55] : memref<32x64xbf16, #tpu.memory_space<vmem>>, vector<32x64xbf16>
    %cst_56 = arith.constant dense<0.000000e+00> : vector<16x64xf32>
    %147 = tpu.matmul %145, %146, %cst_56 {dimension_numbers = #tpu.dot_dimension_numbers<[1], [0], [0], [1], [0, 0, 1, 1], [], []>} : vector<16x32xbf16>, vector<32x64xbf16>, vector<16x64xf32> -> vector<16x64xf32>
    %c0_57 = arith.constant 0 : index
    %c0_58 = arith.constant 0 : index
    %148 = vector.load %arg13[%c0_57, %c0_58] : memref<1x64xf32, #tpu.memory_space<vmem>>, vector<1x64xf32>
    %149 = vector.broadcast %148 : vector<1x64xf32> to vector<16x64xf32>
    %150 = arith.addf %147, %149 : vector<16x64xf32>
    %151 = arith.mulf %150, %150 : vector<16x64xf32>
    %152 = arith.mulf %150, %151 : vector<16x64xf32>
    %cst_59 = arith.constant 4.471500e-02 : f32
    %153 = vector.broadcast %cst_59 : f32 to vector<16x64xf32>
    %154 = arith.mulf %153, %152 : vector<16x64xf32>
    %155 = arith.addf %150, %154 : vector<16x64xf32>
    %cst_60 = arith.constant 0.797884583 : f32
    %156 = vector.broadcast %cst_60 : f32 to vector<16x64xf32>
    %157 = arith.mulf %156, %155 : vector<16x64xf32>
    %158 = math.tanh %157 : vector<16x64xf32>
    %cst_61 = arith.constant 1.000000e+00 : f32
    %159 = vector.broadcast %cst_61 : f32 to vector<16x64xf32>
    %160 = arith.addf %159, %158 : vector<16x64xf32>
    %cst_62 = arith.constant 5.000000e-01 : f32
    %161 = vector.broadcast %cst_62 : f32 to vector<16x64xf32>
    %162 = arith.mulf %161, %160 : vector<16x64xf32>
    %163 = arith.mulf %150, %162 : vector<16x64xf32>
    %164 = arith.truncf %163 : vector<16x64xf32> to vector<16x64xbf16>
    %c0_63 = arith.constant 0 : index
    %c0_64 = arith.constant 0 : index
    %165 = vector.load %arg14[%c0_63, %c0_64] : memref<64x32xbf16, #tpu.memory_space<vmem>>, vector<64x32xbf16>
    %cst_65 = arith.constant dense<0.000000e+00> : vector<16x32xf32>
    %166 = tpu.matmul %164, %165, %cst_65 {dimension_numbers = #tpu.dot_dimension_numbers<[1], [0], [0], [1], [0, 0, 1, 1], [], []>} : vector<16x64xbf16>, vector<64x32xbf16>, vector<16x32xf32> -> vector<16x32xf32>
    %c0_66 = arith.constant 0 : index
    %c0_67 = arith.constant 0 : index
    %167 = vector.load %arg15[%c0_66, %c0_67] : memref<1x32xf32, #tpu.memory_space<vmem>>, vector<1x32xf32>
    %168 = vector.broadcast %167 : vector<1x32xf32> to vector<16x32xf32>
    %169 = arith.addf %166, %168 : vector<16x32xf32>
    %170 = arith.addf %118, %169 : vector<16x32xf32>
    %171 = arith.truncf %170 : vector<16x32xf32> to vector<16x32xbf16>
    %c0_68 = arith.constant 0 : index
    %c0_69 = arith.constant 0 : index
    %172 = vector.load %arg20[%c0_68, %c0_69] : memref<16x32xbf16, #tpu.memory_space<vmem>>, vector<16x32xbf16>
    tpu.vector_store %arg20[%c0_68, %c0_69], %171 {strides = array<i32>} : memref<16x32xbf16, #tpu.memory_space<vmem>>, vector<16x32xbf16>,
    %173 = arith.truncf %170 : vector<16x32xf32> to vector<16x32xbf16>
    %c0_70 = arith.constant 0 : index
    %c0_71 = arith.constant 0 : index
    %174 = vector.load %arg16[%c0_70, %c0_71] : memref<32x32xbf16, #tpu.memory_space<vmem>>, vector<32x32xbf16>
    %cst_72 = arith.constant dense<0.000000e+00> : vector<16x32xf32>
    %175 = tpu.matmul %173, %174, %cst_72 {dimension_numbers = #tpu.dot_dimension_numbers<[1], [0], [0], [1], [0, 0, 1, 1], [], []>} : vector<16x32xbf16>, vector<32x32xbf16>, vector<16x32xf32> -> vector<16x32xf32>
    %c0_73 = arith.constant 0 : index
    %c0_74 = arith.constant 0 : index
    %176 = vector.load %arg17[%c0_73, %c0_74] : memref<1x32xf32, #tpu.memory_space<vmem>>, vector<1x32xf32>
    %177 = vector.broadcast %176 : vector<1x32xf32> to vector<16x32xf32>
    %178 = arith.addf %175, %177 : vector<16x32xf32>
    %179 = arith.mulf %178, %178 : vector<16x32xf32>
    %180 = arith.mulf %178, %179 : vector<16x32xf32>
    %cst_75 = arith.constant 4.471500e-02 : f32
    %181 = vector.broadcast %cst_75 : f32 to vector<16x32xf32>
    %182 = arith.mulf %181, %180 : vector<16x32xf32>
    %183 = arith.addf %178, %182 : vector<16x32xf32>
    %cst_76 = arith.constant 0.797884583 : f32
    %184 = vector.broadcast %cst_76 : f32 to vector<16x32xf32>
    %185 = arith.mulf %184, %183 : vector<16x32xf32>
    %186 = math.tanh %185 : vector<16x32xf32>
    %cst_77 = arith.constant 1.000000e+00 : f32
    %187 = vector.broadcast %cst_77 : f32 to vector<16x32xf32>
    %188 = arith.addf %187, %186 : vector<16x32xf32>
    %cst_78 = arith.constant 5.000000e-01 : f32
    %189 = vector.broadcast %cst_78 : f32 to vector<16x32xf32>
    %190 = arith.mulf %189, %188 : vector<16x32xf32>
    %191 = arith.mulf %178, %190 : vector<16x32xf32>
    %192 = arith.truncf %191 : vector<16x32xf32> to vector<16x32xbf16>
    %c0_79 = arith.constant 0 : index
    %c0_80 = arith.constant 0 : index
    %193 = vector.load %arg18[%c0_79, %c0_80] : memref<32x16xbf16, #tpu.memory_space<vmem>>, vector<32x16xbf16>
    %cst_81 = arith.constant dense<0.000000e+00> : vector<16x16xf32>
    %194 = tpu.matmul %192, %193, %cst_81 {dimension_numbers = #tpu.dot_dimension_numbers<[1], [0], [0], [1], [0, 0, 1, 1], [], []>} : vector<16x32xbf16>, vector<32x16xbf16>, vector<16x16xf32> -> vector<16x16xf32>
    %c0_82 = arith.constant 0 : index
    %c0_83 = arith.constant 0 : index
    %195 = vector.load %arg19[%c0_82, %c0_83] : memref<1x16xf32, #tpu.memory_space<vmem>>, vector<1x16xf32>
    %196 = vector.broadcast %195 : vector<1x16xf32> to vector<16x16xf32>
    %197 = arith.addf %194, %196 : vector<16x16xf32>
    %c0_84 = arith.constant 0 : index
    %c0_85 = arith.constant 0 : index
    %198 = vector.load %arg21[%c0_84, %c0_85] : memref<16x16xf32, #tpu.memory_space<vmem>>, vector<16x16xf32>
    tpu.vector_store %arg21[%c0_84, %c0_85], %197 {strides = array<i32>} : memref<16x16xf32, #tpu.memory_space<vmem>>, vector<16x16xf32>,
    return
  }
  func.func @transform_0(%arg0: i32) -> (i32, i32) {
    %c0_i32 = arith.constant 0 : i32
    %c0_i32_0 = arith.constant 0 : i32
    %c0_i32_1 = arith.constant 0 : i32
    return %c0_i32, %c0_i32_0 : i32, i32
  }
  func.func @transform_1(%arg0: i32) -> (i32, i32, i32) {
    %c0_i32 = arith.constant 0 : i32
    %c0_i32_0 = arith.constant 0 : i32
    %c0_i32_1 = arith.constant 0 : i32
    %c0_i32_2 = arith.constant 0 : i32
    return %c0_i32, %c0_i32_0, %c0_i32_1 : i32, i32, i32
  }
  func.func @transform_2(%arg0: i32) -> (i32, i32, i32) {
    %c0_i32 = arith.constant 0 : i32
    %c0_i32_0 = arith.constant 0 : i32
    %c0_i32_1 = arith.constant 0 : i32
    %c0_i32_2 = arith.constant 0 : i32
    return %c0_i32, %c0_i32_0, %c0_i32_1 : i32, i32, i32
  }
  func.func @transform_3(%arg0: i32) -> (i32, i32) {
    %c0_i32 = arith.constant 0 : i32
    %c0_i32_0 = arith.constant 0 : i32
    %c0_i32_1 = arith.constant 0 : i32
    return %c0_i32, %c0_i32_0 : i32, i32
  }
  func.func @transform_4(%arg0: i32) -> (i32, i32) {
    %c0_i32 = arith.constant 0 : i32
    %c0_i32_0 = arith.constant 0 : i32
    %c0_i32_1 = arith.constant 0 : i32
    return %c0_i32, %c0_i32_0 : i32, i32
  }
  func.func @transform_5(%arg0: i32) -> (i32, i32) {
    %c0_i32 = arith.constant 0 : i32
    %c0_i32_0 = arith.constant 0 : i32
    %c0_i32_1 = arith.constant 0 : i32
    return %c0_i32, %c0_i32_0 : i32, i32
  }
  func.func @transform_6(%arg0: i32) -> (i32, i32) {
    %c0_i32 = arith.constant 0 : i32
    %c0_i32_0 = arith.constant 0 : i32
    %c0_i32_1 = arith.constant 0 : i32
    return %c0_i32, %c0_i32_0 : i32, i32
  }
  func.func @transform_7(%arg0: i32) -> (i32, i32) {
    %c0_i32 = arith.constant 0 : i32
    %c0_i32_0 = arith.constant 0 : i32
    %c0_i32_1 = arith.constant 0 : i32
    return %c0_i32, %c0_i32_0 : i32, i32
  }
  func.func @transform_8(%arg0: i32) -> (i32, i32) {
    %c0_i32 = arith.constant 0 : i32
    %c0_i32_0 = arith.constant 0 : i32
    %c0_i32_1 = arith.constant 0 : i32
    return %c0_i32, %c0_i32_0 : i32, i32
  }
  func.func @transform_9(%arg0: i32) -> (i32, i32) {
    %c0_i32 = arith.constant 0 : i32
    %c0_i32_0 = arith.constant 0 : i32
    %c0_i32_1 = arith.constant 0 : i32
    return %c0_i32, %c0_i32_0 : i32, i32
  }
  func.func @transform_10(%arg0: i32) -> (i32, i32) {
    %c0_i32 = arith.constant 0 : i32
    %c0_i32_0 = arith.constant 0 : i32
    %c0_i32_1 = arith.constant 0 : i32
    return %c0_i32, %c0_i32_0 : i32, i32
  }
  func.func @transform_11(%arg0: i32) -> (i32, i32) {
    %c0_i32 = arith.constant 0 : i32
    %c0_i32_0 = arith.constant 0 : i32
    %c0_i32_1 = arith.constant 0 : i32
    return %c0_i32, %c0_i32_0 : i32, i32
  }
  func.func @transform_12(%arg0: i32) -> (i32, i32) {
    %c0_i32 = arith.constant 0 : i32
    %c0_i32_0 = arith.constant 0 : i32
    %c0_i32_1 = arith.constant 0 : i32
    return %c0_i32, %c0_i32_0 : i32, i32
  }
  func.func @transform_13(%arg0: i32) -> (i32, i32) {
    %c0_i32 = arith.constant 0 : i32
    %c0_i32_0 = arith.constant 0 : i32
    %c0_i32_1 = arith.constant 0 : i32
    return %c0_i32, %c0_i32_0 : i32, i32
  }
  func.func @transform_14(%arg0: i32) -> (i32, i32) {
    %c0_i32 = arith.constant 0 : i32
    %c0_i32_0 = arith.constant 0 : i32
    %c0_i32_1 = arith.constant 0 : i32
    return %c0_i32, %c0_i32_0 : i32, i32
  }
  func.func @transform_15(%arg0: i32) -> (i32, i32) {
    %c0_i32 = arith.constant 0 : i32
    %c0_i32_0 = arith.constant 0 : i32
    %c0_i32_1 = arith.constant 0 : i32
    return %c0_i32, %c0_i32_0 : i32, i32
  }
  func.func @transform_16(%arg0: i32) -> (i32, i32) {
    %c0_i32 = arith.constant 0 : i32
    %c0_i32_0 = arith.constant 0 : i32
    %c0_i32_1 = arith.constant 0 : i32
    return %c0_i32, %c0_i32_0 : i32, i32
  }
  func.func @transform_17(%arg0: i32) -> (i32, i32) {
    %c0_i32 = arith.constant 0 : i32
    %c0_i32_0 = arith.constant 0 : i32
    %c0_i32_1 = arith.constant 0 : i32
    return %c0_i32, %c0_i32_0 : i32, i32
  }
  func.func @transform_18(%arg0: i32) -> (i32, i32) {
    %c0_i32 = arith.constant 0 : i32
    %c0_i32_0 = arith.constant 0 : i32
    %c0_i32_1 = arith.constant 0 : i32
    return %c0_i32, %c0_i32_0 : i32, i32
  }
  func.func @transform_19(%arg0: i32) -> (i32, i32) {
    %c0_i32 = arith.constant 0 : i32
    %c0_i32_0 = arith.constant 0 : i32
    %c0_i32_1 = arith.constant 0 : i32
    return %c0_i32, %c0_i32_0 : i32, i32
  }
  func.func @transform_20(%arg0: i32) -> (i32, i32) {
    %c0_i32 = arith.constant 0 : i32
    %c0_i32_0 = arith.constant 0 : i32
    %c0_i32_1 = arith.constant 0 : i32
    return %c0_i32, %c0_i32_0 : i32, i32
  }
}

</mosaic_0001>

<bundles_post_ra>
// kernel: forward.2
= control target key start
LH: loop header
LB: loop body
LE: loop exit
PB: predicated region body
PF: predicated region fallthrough
CT: control target
= control target key end

     0   :  { %vm55_vm0 = vcmask 261120   ;;  %v1238_v16 = vmov 0.0   ;;  %vm1239_vm1 = vmmov 0   ;;  %vm201_vm2 = vcmask 130048   ;;  %s1244_s19 = smov 112   ;;  %s1550_s0 = inlined_call_operand.vmem [shape: bf16[16,32], index: 0, kind: input, shape index: {}]   ;;  %s1551_s5 = inlined_call_operand.vmem [shape: bf16[32,96], index: 5, kind: input, shape index: {}]   ;;  %s1552_s3 = inlined_call_operand.vmem [shape: f32[1,32], index: 3, kind: input, shape index: {}]   ;;  %s1553_s4 = inlined_call_operand.vmem [shape: f32[1,32], index: 4, kind: input, shape index: {}]   ;;  %s1554_s6 = inlined_call_operand.vmem [shape: f32[1,96], index: 6, kind: input, shape index: {}]   ;;  %s1555_s1 = inlined_call_operand.vmem [shape: f32[2,1,8], index: 1, kind: input, shape index: {}]   ;;  %s1556_s2 = inlined_call_operand.vmem [shape: f32[2,1,8], index: 2, kind: input, shape index: {}]   ;;  %s1557_s7 = inlined_call_operand.vmem [shape: bf16[32,32], index: 7, kind: input, shape index: {}]   ;;  %s1558_s8 = inlined_call_operand.vmem [shape: f32[1,32], index: 8, kind: input, shape index: {}]   ;;  %s1559_s11 = inlined_call_operand.vmem [shape: bf16[32,64], index: 11, kind: input, shape index: {}]   ;;  %s1560_s9 = inlined_call_operand.vmem [shape: f32[1,32], index: 9, kind: input, shape index: {}]   ;;  %s1561_s10 = inlined_call_operand.vmem [shape: f32[1,32], index: 10, kind: input, shape index: {}]   ;;  %s1562_s13 = inlined_call_operand.vmem [shape: bf16[64,32], index: 13, kind: input, shape index: {}]   ;;  %s1563_s12 = inlined_call_operand.vmem [shape: f32[1,64], index: 12, kind: input, shape index: {}]   ;;  %s1564_s14 = inlined_call_operand.vmem [shape: f32[1,32], index: 14, kind: input, shape index: {}]   ;;  %s1565_s15 = inlined_call_operand.vmem [shape: bf16[16,32], index: 15, kind: output, shape index: {}]  }
   0x1   :  { %v1062_v0 = vld [vmem:[%s1550_s0] sm:$0xff]   ;;  %1096 = vmatprep.subr.bf16.mxu1 %v1238_v16  ;;  %1110 = vmatprep.subr.bf16.mxu0 %v1238_v16  ;;  %v1193_v17 = vld [vmem:[%s1551_s5 + $0x8] sm:$0xff]   ;;  %v173_v48 = vlaneseq  ;;  %vm321_vm9 = vcmask 64512   ;;  %vm351_vm11 = vcmask 1043456   ;;  %s1245_s0 = smov 48   ;;  %vm962_vm12 = vcmask 523264  }
   0x2   :  { %v1329_v1 = vunpack.c.l.bf16 %v1062_v0  ;;  %v1331_v2 = vunpack.c.h.bf16 %v1062_v0  ;;  %v1192_v15 = vld [vmem:[%s1551_s5] sm:$0xff]   ;;  %1100 = vmatprep.mubr.msk.bf16.mxu1 %vm1239_vm1, %v1238_v16  ;;  %1112 = vmatprep.mubr.msk.bf16.mxu0 %vm1239_vm1, %v1238_v16  ;;  %vm1017_vm13 = vcmask 257024  }
   0x3   :  { %1097 = vmatpush3.bf16.msra.mxu1 %v1192_v15  ;;  %v1024_v26 = vld [vmem:[%s1552_s3] ss:$0 sm:$0xff]  ;;  %s1240_s3 = smov 96   ;;  %v1396_v55 = vld [vmem:[%s1555_s1 + $0x1] ss:$0 sm:$0xff]  ;;  %v174_v57 = vshrl.u32 %v173_v48, 7 }
   0x4   :  { %v56_v3 = vsel %vm55_vm0, %v1329_v1, 0.0  ;;  %v59_v4 = vsel %vm55_vm0, %v1331_v2, 0.0  ;;  %1098 = vmatprep.subr.bf16.mxu1 %v1238_v16  ;;  %v1025_v30 = vld [vmem:[%s1553_s4] ss:$0 sm:$0xff]  ;;  %v172_v62 = vld [vmem:[%s1556_s2 + $0x1] sm:$0x1] }
   0x5   :  { %57 = vadd.xlane.f32.xlu0 %v56_v3  ;;  %v1026_v35 = vld [vmem:[%s1554_s6] ss:$0 sm:$0xff]  ;;  %vm179_vm4 = vcmp.gt.f32.partialorder %v172_v62, 0.5 }
   0x6   :  { %v1388_v49 = vld [vmem:[%s1555_s1] ss:$0 sm:$0xff]  ;;  %s1242_s1 = smov 64  }
   0x7   :  { %1099 = vmatpush3.bf16.msra.mxu1 %v1193_v17  ;;  %v171_v53 = vld [vmem:[%s1556_s2] sm:$0x1]  ;;  %s1243_s2 = smov 80  }
   0x8   :  { %1104 = vmatprep.subr.bf16.mxu1 %v1238_v16  ;;  %vm178_vm3 = vcmp.gt.f32.partialorder %v171_v53, 0.5 }
   0x9   :  { %60 = vadd.xlane.f32.xlu0 %v59_v4 }
  0x92   :  { %v58_v5 = vpop.xlane.xlu0 %57 }
  0x93   :  { %v63_v6 = vmul.f32 0.03125, %v58_v5  ;;  %v186_v5 = vsub.s32 0, %v174_v57 }
  0x95   :  { %v65_v7 = vsub.f32 %v1329_v1, %v63_v6 }
  0x96   :  { %v61_v8 = vpop.xlane.xlu0 %60 }
  0x97   :  { %v64_v9 = vmul.f32 0.03125, %v61_v8  ;;  %v67_v10 = vmul.f32 %v65_v7, %v65_v7 }
  0x99   :  { %v66_v11 = vsub.f32 %v1331_v2, %v64_v9  ;;  %v69_v12 = vsel %vm55_vm0, %v67_v10, 0.0  ;;  %v176_v10 = vand.u32 127, %v173_v48 }
  0x9a   :  { %70 = vadd.xlane.f32.xlu1 %v69_v12 }
  0x9b   :  { %v68_v13 = vmul.f32 %v66_v11, %v66_v11  ;;  %vm177_vm5 = vcmp.ge.s32.totalorder %v174_v57, %v176_v10 }
  0x9d   :  { %v72_v14 = vsel %vm55_vm0, %v68_v13, 0.0 }
  0x9e   :  { %73 = vadd.xlane.f32.xlu1 %v72_v14 }
 0x127   :  { %v71_v18 = vpop.xlane.xlu1 %70 }
 0x128   :  { %v75_v19 = vmul.f32 0.03125, %v71_v18 }
 0x12a   :  { %v77_v20 = vadd.f32 1e-05, %v75_v19 }
 0x12b   :  { %v74_v21 = vpop.xlane.xlu1 %73 }
 0x12c   :  { %1202 = vrsqrt.f32 %v77_v20  ;;  %v76_v22 = vmul.f32 0.03125, %v74_v21 }
 0x12e   :  { %v78_v23 = vadd.f32 1e-05, %v76_v22 }
 0x130   :  { %1204 = vrsqrt.f32 %v78_v23 }
 0x136   :  { %v1203_v24 = vpop.eup %1202 }
 0x137   :  { %v81_v25 = vmul.f32 %v1203_v24, %v65_v7  ;;  %v1241_v7 = vmov 0  }
 0x138   :  { %v182_v8 = vsel %vm178_vm3, 1, %v1241_v7  ;;  %v183_v9 = vsel %vm179_vm4, 1, %v1241_v7 }
 0x139   :  { %v90_v29 = vmul.f32 %v1024_v26, %v81_v25  ;;  %v191_v12 = vrot.slane %v183_v9, %v186_v5 }
 0x13a   :  { %v1205_v27 = vpop.eup %1204 }
 0x13b   :  { %v82_v28 = vmul.f32 %v1205_v27, %v66_v11  ;;  %v99_v32 = vadd.f32 %v1025_v30, %v90_v29  ;;  %v187_v11 = vrot.slane %v182_v8, %v186_v5  ;;  %vm193_vm7 = vcmp.eq.s32.totalorder %v191_v12, 1 }
 0x13c   :  { %vm1407_vm10 = vmand %vm177_vm5, %vm193_vm7 }
 0x13d   :  { %v91_v31 = vmul.f32 %v1024_v26, %v82_v28  ;;  %vm192_vm6 = vcmp.eq.s32.totalorder %v187_v11, 1 }
 0x13e   :  { %vm1403_vm8 = vmand %vm177_vm5, %vm192_vm6 }
 0x13f   :  { %v100_v33 = vadd.f32 %v1025_v30, %v91_v31 }
 0x141   :  { %v101_v34 = vpack.c.bf16 %v100_v33, %v99_v32 }
 0x143   :  { %1101 = vmatmul.mubr.msk.bf16.vlgmr.msra.gmra.mrb[0].mxu1 %vm55_vm0, %v101_v34 }
 0x144   :  { %1106 = vmatprep.mubr.msk.bf16.mxu1 %vm1239_vm1, %v1238_v16 }
 0x216   :  { %v162_v36 = vpop.f32.mrb[0].mxu1 }
 0x217   :  { %v163_v37 = vadd.f32 %v1026_v35, %v162_v36  ;;  %v1102_v38 = vpop.f32.mrb[1].mxu1 }
 0x218   :  { %v165_v39 = vpop.f32.mrb[2].mxu1 }
 0x219   :  { %v1367_v40 = vpack.c.bf16 %v163_v37, %v163_v37  ;;  %v166_v41 = vadd.f32 %v1026_v35, %v165_v39  ;;  %v1103_v42 = vpop.f32.mrb[3].mxu1 }
 0x21b   :  { %v1369_v43 = vpack.c.bf16 %v166_v41, %v166_v41  ;;  %199 = vrot.lane.b32.xlu0 %v1367_v40, %s1240_s3 }
 0x21d   :  { %249 = vrot.lane.b32.xlu1 %v1369_v43, %s1240_s3 }
 0x28d   :  { %v200_v44 = vpop.permute.xlu0 %199 }
 0x28e   :  { %v206_v45 = vsel %vm201_vm2, %v200_v44, 0 }
 0x28f   :  { %1105 = vmatpush3.bf16.xpose.msra.mxu1 %v206_v45  ;;  %v250_v46 = vpop.permute.xlu1 %249 }
 0x290   :  { %v255_v47 = vsel %vm201_vm2, %v250_v46, 0  ;;  %1116 = vmatprep.subr.bf16.mxu1 %v1238_v16 }
 0x291   :  { %1111 = vmatpush3.bf16.xpose.msra.mxu0 %v255_v47 }
 0x292   :  { %1122 = vmatprep.subr.bf16.mxu0 %v1238_v16 }
 0x296   :  { %1107 = vmatmul.mubr.msk.bf16.vlgmr.msra.gmra.mrb[4].mxu1 %vm201_vm2, %v1367_v40 }
 0x297   :  { %1118 = vmatprep.mubr.msk.bf16.mxu1 %vm1239_vm1, %v1238_v16 }
 0x298   :  { %1113 = vmatmul.mubr.msk.bf16.vlgmr.msra.gmra.mrb[0].mxu0 %vm201_vm2, %v1369_v43 }
 0x299   :  { %1124 = vmatprep.mubr.msk.bf16.mxu0 %vm1239_vm1, %v1238_v16 }
 0x369   :  { %v242_v50 = vpop.f32.mrb[4].mxu1 }
 0x36a   :  { %v297_v51 = vmul.f32 0.25, %v242_v50  ;;  %v1108_v52 = vpop.f32.mrb[5].mxu1 }
 0x36b   :  { %v245_v54 = vpop.f32.mrb[6].mxu1  ;;  %v291_v56 = vpop.f32.mrb[0].mxu0 }
 0x36c   :  { %v311_v58 = vadd.f32 %v1388_v49, %v297_v51  ;;  %v298_v59 = vmul.f32 0.25, %v291_v56  ;;  %v1109_v60 = vpop.f32.mrb[7].mxu1  ;;  %v1114_v61 = vpop.f32.mrb[1].mxu0 }
 0x36d   :  { %v294_v63 = vpop.f32.mrb[2].mxu0 }
 0x36e   :  { %v313_v0 = vmul.f32 0.033333335, %v311_v58  ;;  %v312_v3 = vadd.f32 %v1396_v55, %v298_v59  ;;  %v1115_v4 = vpop.f32.mrb[3].mxu0 }
 0x370   :  { %1206 = vtanh.f32 %v313_v0  ;;  %v314_v6 = vmul.f32 0.033333335, %v312_v3 }
 0x372   :  { %1208 = vtanh.f32 %v314_v6 }
 0x37a   :  { %v1207_v13 = vpop.eup %1206 }
 0x37b   :  { %v317_v15 = vmul.f32 30.0, %v1207_v13 }
 0x37c   :  { %v1209_v17 = vpop.eup %1208 }
 0x37d   :  { %v319_v19 = vsel %vm1403_vm8, %v317_v15, -1e+30  ;;  %v318_v20 = vmul.f32 30.0, %v1209_v17 }
 0x37e   :  { %v322_v21 = vsel %vm321_vm9, %v319_v19, -inf }
 0x37f   :  { %323 = vmax.xlane.f32.xlu1 %v322_v21  ;;  %v320_v22 = vsel %vm1407_vm10, %v318_v20, -1e+30 }
 0x380   :  { %v325_v23 = vsel %vm321_vm9, %v320_v22, -inf }
 0x381   :  { %326 = vmax.xlane.f32.xlu0 %v325_v23 }
 0x390   :  { %395 = vrot.lane.b32.xlu1 %v1369_v43, %s1242_s1 }
 0x394   :  { %448 = vrot.lane.b32.xlu1 %v1367_v40, %s1243_s2 }
 0x40c   :  { %v324_v24 = vpop.xlane.xlu1 %323 }
 0x40d   :  { %v328_v25 = vsub.f32 %v319_v19, %v324_v24 }
 0x40e   :  { %v327_v26 = vpop.xlane.xlu0 %326 }
 0x40f   :  { %v330_v27 = vmul.f32 1.442695, %v328_v25  ;;  %v329_v28 = vsub.f32 %v320_v22, %v327_v26 }
 0x410   :  { %v396_v29 = vpop.permute.xlu1 %395 }
 0x411   :  { %1210 = vpow2.f32 %v330_v27  ;;  %v332_v30 = vmul.f32 1.442695, %v329_v28  ;;  %v401_v31 = vsel %vm351_vm11, %v396_v29, 0 }
 0x412   :  { %1123 = vmatpush3.bf16.msra.mxu0 %v401_v31 }
 0x413   :  { %1212 = vpow2.f32 %v332_v30  ;;  %1134 = vmatprep.subr.bf16.mxu0 %v1238_v16 }
 0x414   :  { %v449_v36 = vpop.permute.xlu1 %448 }
 0x415   :  { %v454_v50 = vsel %vm201_vm2, %v449_v36, 0 }
 0x41b   :  { %v1211_v32 = vpop.eup %1210 }
 0x41c   :  { %v334_v33 = vsel %vm321_vm9, %v1211_v32, 0.0 }
 0x41d   :  { %v1213_v34 = vpop.eup %1212  ;;  %335 = vadd.xlane.f32.xlu0 %v334_v33 }
 0x41e   :  { %v337_v35 = vsel %vm321_vm9, %v1213_v34, 0.0 }
 0x41f   :  { %338 = vadd.xlane.f32.xlu1 %v337_v35 }
 0x430   :  { %498 = vrot.lane.b32.xlu1 %v1369_v43, %s1243_s2 }
 0x433   :  { %346 = vrot.lane.b32.xlu0 %v1367_v40, %s1242_s1 }
 0x434   :  { %496 = vrot.lane.b32.xlu1 %v1369_v43, %s1244_s19 }
 0x437   :  { %446 = vrot.lane.b32.xlu0 %v1367_v40, %s1244_s19 }
 0x4aa   :  { %v336_v37 = vpop.xlane.xlu0 %335 }
 0x4ab   :  { %1214 = vrcp.f32 %v336_v37 }
 0x4ac   :  { %v339_v38 = vpop.xlane.xlu1 %338 }
 0x4ad   :  { %1216 = vrcp.f32 %v339_v38 }
 0x4ae   :  { %v347_v39 = vpop.permute.xlu0 %346 }
 0x4af   :  { %v353_v41 = vsel %vm351_vm11, %v347_v39, 0 }
 0x4b0   :  { %1117 = vmatpush3.bf16.msra.mxu1 %v353_v41  ;;  %v499_v48 = vpop.permute.xlu1 %498 }
 0x4b1   :  { %1128 = vmatprep.subr.bf16.mxu1 %v1238_v16  ;;  %v504_v52 = vsel %vm201_vm2, %v499_v48, 0 }
 0x4b2   :  { %v447_v53 = vpop.permute.xlu0 %446 }
 0x4b4   :  { %v497_v54 = vpop.permute.xlu1 %496 }
 0x4b5   :  { %v1215_v42 = vpop.eup %1214 }
 0x4b6   :  { %v341_v44 = vmul.f32 %v1215_v42, %v1211_v32 }
 0x4b7   :  { %v1217_v45 = vpop.eup %1216 }
 0x4b8   :  { %v343_v46 = vmul.f32 %v1217_v45, %v1213_v34  ;;  %v344_v47 = vpack.c.bf16 %v341_v44, %v341_v44 }
 0x4ba   :  { %1119 = vmatmul.mubr.msk.bf16.vlgmr.msra.gmra.mrb[8].mxu1 %vm321_vm9, %v344_v47  ;;  %v345_v51 = vpack.c.bf16 %v343_v46, %v343_v46  ;;  %v1195_v47 = vld [vmem:[%s1557_s7 + $0x8] sm:$0xff]  }
 0x4bb   :  { %1129 = vmatpush3.bf16.xpose.msra.mxu1 %v454_v50  ;;  %1130 = vmatprep.mubr.msk.bf16.mxu1 %vm1239_vm1, %v1238_v16 }
 0x4bc   :  { %1125 = vmatmul.mubr.msk.bf16.vlgmr.msra.gmra.mrb[4].mxu0 %vm321_vm9, %v345_v51  ;;  %1140 = vmatprep.subr.bf16.mxu1 %v1238_v16 }
 0x4bd   :  { %1135 = vmatpush3.bf16.xpose.msra.mxu0 %v504_v52  ;;  %1136 = vmatprep.mubr.msk.bf16.mxu0 %vm1239_vm1, %v1238_v16 }
 0x4be   :  { %1146 = vmatprep.subr.bf16.mxu0 %v1238_v16 }
 0x4c2   :  { %1131 = vmatmul.mubr.msk.bf16.vlgmr.msra.gmra.mrb[12].mxu1 %vm201_vm2, %v447_v53 }
 0x4c3   :  { %1142 = vmatprep.mubr.msk.bf16.mxu1 %vm1239_vm1, %v1238_v16 }
 0x4c4   :  { %1137 = vmatmul.mubr.msk.bf16.vlgmr.msra.gmra.mrb[8].mxu0 %vm201_vm2, %v497_v54 }
 0x4c5   :  { %1148 = vmatprep.mubr.msk.bf16.mxu0 %vm1239_vm1, %v1238_v16 }
 0x58d   :  { %v1445_v56 = vpop.f32.mrb[8].mxu1 }
 0x58e   :  { %v1120_v57 = vpop.f32.mrb[9].mxu1 }
 0x58f   :  { %v392_v58 = vpop.f32.mrb[10].mxu1  ;;  %v1447_v59 = vpop.f32.mrb[4].mxu0 }
 0x590   :  { %v443_v60 = vpack.c.bf16 %v1447_v59, %v1445_v56  ;;  %v1121_v61 = vpop.f32.mrb[11].mxu1  ;;  %v1126_v62 = vpop.f32.mrb[5].mxu0 }
 0x591   :  { %v440_v63 = vpop.f32.mrb[6].mxu0 }
 0x592   :  { %v1127_v0 = vpop.f32.mrb[7].mxu0 }
 0x595   :  { %v490_v3 = vpop.f32.mrb[12].mxu1 }
 0x596   :  { %v546_v4 = vmul.f32 0.25, %v490_v3  ;;  %v1132_v5 = vpop.f32.mrb[13].mxu1 }
 0x597   :  { %v493_v6 = vpop.f32.mrb[14].mxu1  ;;  %v540_v7 = vpop.f32.mrb[8].mxu0 }
 0x598   :  { %v548_v8 = vadd.f32 %v1388_v49, %v546_v4  ;;  %v547_v9 = vmul.f32 0.25, %v540_v7  ;;  %v1133_v10 = vpop.f32.mrb[15].mxu1  ;;  %v1138_v11 = vpop.f32.mrb[9].mxu0  ;;  %v1044_v4 = vld [vmem:[%s1558_s8] ss:$0 sm:$0xff] }
 0x599   :  { %v543_v12 = vpop.f32.mrb[10].mxu0 }
 0x59a   :  { %v550_v13 = vmul.f32 0.033333335, %v548_v8  ;;  %v549_v15 = vadd.f32 %v1396_v55, %v547_v9  ;;  %v1139_v17 = vpop.f32.mrb[11].mxu0 }
 0x59c   :  { %1218 = vtanh.f32 %v550_v13  ;;  %v551_v19 = vmul.f32 0.033333335, %v549_v15 }
 0x59e   :  { %1220 = vtanh.f32 %v551_v19 }
 0x5a6   :  { %v1219_v20 = vpop.eup %1218 }
 0x5a7   :  { %v554_v21 = vmul.f32 30.0, %v1219_v20 }
 0x5a8   :  { %v1221_v22 = vpop.eup %1220 }
 0x5a9   :  { %v556_v23 = vsel %vm1403_vm8, %v554_v21, -1e+30  ;;  %v555_v24 = vmul.f32 30.0, %v1221_v22 }
 0x5aa   :  { %v558_v49 = vsel %vm321_vm9, %v556_v23, -inf }
 0x5ab   :  { %559 = vmax.xlane.f32.xlu0 %v558_v49  ;;  %v557_v25 = vsel %vm1407_vm10, %v555_v24, -1e+30  ;;  %v1196_v49 = vld [vmem:[%s1559_s11] sm:$0xff]  }
 0x5ac   :  { %v561_v26 = vsel %vm321_vm9, %v557_v25, -inf }
 0x5ad   :  { %562 = vmax.xlane.f32.xlu1 %v561_v26 }
 0x5be   :  { %630 = vrot.lane.b32.xlu1 %v1369_v43, %s1245_s0 }
 0x638   :  { %v560_v55 = vpop.xlane.xlu0 %559 }
 0x639   :  { %v564_v27 = vsub.f32 %v556_v23, %v560_v55 }
 0x63a   :  { %v563_v28 = vpop.xlane.xlu1 %562 }
 0x63b   :  { %v566_v29 = vmul.f32 1.442695, %v564_v27  ;;  %v565_v30 = vsub.f32 %v557_v25, %v563_v28  ;;  %v1197_v25 = vld [vmem:[%s1559_s11 + $0x8] sm:$0xff]  }
 0x63d   :  { %1222 = vpow2.f32 %v566_v29  ;;  %v568_v14 = vmul.f32 1.442695, %v565_v30 }
 0x63e   :  { %v631_v31 = vpop.permute.xlu1 %630 }
 0x63f   :  { %1224 = vpow2.f32 %v568_v14  ;;  %v636_v32 = vsel %vm351_vm11, %v631_v31, 0  ;;  %v1045_v31 = vld [vmem:[%s1560_s9] ss:$0 sm:$0xff] }
 0x640   :  { %1147 = vmatpush3.bf16.msra.mxu0 %v636_v32 }
 0x641   :  { %1158 = vmatprep.subr.bf16.mxu0 %v1238_v16 }
 0x647   :  { %v1223_v18 = vpop.eup %1222 }
 0x648   :  { %v570_v33 = vsel %vm321_vm9, %v1223_v18, 0.0 }
 0x649   :  { %v1225_v34 = vpop.eup %1224  ;;  %571 = vadd.xlane.f32.xlu0 %v570_v33 }
 0x64a   :  { %v573_v43 = vsel %vm321_vm9, %v1225_v34, 0.0 }
 0x64d   :  { %574 = vadd.xlane.f32.xlu0 %v573_v43  ;;  %v1046_v43 = vld [vmem:[%s1561_s10] ss:$0 sm:$0xff] }
 0x663   :  { %582 = vrot.lane.b32.xlu0 %v1367_v40, %s1245_s0  ;;  %v1194_v40 = vld [vmem:[%s1557_s7] sm:$0xff]  }
 0x6d6   :  { %v572_v35 = vpop.xlane.xlu0 %571 }
 0x6d7   :  { %1226 = vrcp.f32 %v572_v35 }
 0x6da   :  { %v575_v36 = vpop.xlane.xlu0 %574 }
 0x6db   :  { %1228 = vrcp.f32 %v575_v36 }
 0x6de   :  { %v583_v37 = vpop.permute.xlu0 %582 }
 0x6df   :  { %v588_v38 = vsel %vm351_vm11, %v583_v37, 0 }
 0x6e0   :  { %1141 = vmatpush3.bf16.msra.mxu1 %v588_v38 }
 0x6e1   :  { %v1227_v39 = vpop.eup %1226  ;;  %1152 = vmatprep.subr.bf16.mxu1 %v1238_v16 }
 0x6e2   :  { %v577_v41 = vmul.f32 %v1227_v39, %v1223_v18  ;;  %v1198_v39 = vld [vmem:[%s1562_s13] sm:$0xff]  }
 0x6e4   :  { %v580_v42 = vpack.c.bf16 %v577_v41, %v577_v41  ;;  %v1199_v41 = vld [vmem:[%s1562_s13 + $0x8] sm:$0xff]  }
 0x6e5   :  { %v1229_v44 = vpop.eup %1228 }
 0x6e6   :  { %v579_v45 = vmul.f32 %v1229_v44, %v1225_v34  ;;  %1143 = vmatmul.mubr.msk.bf16.vlgmr.msra.gmra.mrb[16].mxu1 %vm321_vm9, %v580_v42  ;;  %v1200_v42 = vld [vmem:[%s1562_s13 + $0x10] sm:$0xff]   ;;  %v1201_v44 = vld [vmem:[%s1562_s13 + $0x18] sm:$0xff]  }
 0x6e7   :  { %1154 = vmatprep.mubr.msk.bf16.mxu1 %vm1239_vm1, %v1238_v16  ;;  %1153 = vmatpush3.bf16.msra.mxu1 %v1195_v47 }
 0x6e8   :  { %v581_v46 = vpack.c.bf16 %v579_v45, %v579_v45  ;;  %1164 = vmatprep.subr.bf16.mxu1 %v1238_v16  ;;  %v1047_v45 = vld [vmem:[%s1563_s12] ss:$0 sm:$0xff] }
 0x6ea   :  { %1149 = vmatmul.mubr.msk.bf16.vlgmr.msra.gmra.mrb[12].mxu0 %vm321_vm9, %v581_v46 }
 0x6eb   :  { %1159 = vmatpush3.bf16.msra.mxu0 %v1194_v40  ;;  %1160 = vmatprep.mubr.msk.bf16.mxu0 %vm1239_vm1, %v1238_v16 }
 0x6ec   :  { %1172 = vmatprep.subr.bf16.mxu0 %v1238_v16 }
 0x6f2   :  { %1161 = vmatmul.mubr.msk.bf16.vlgmr.msra.gmra.mrb[16].mxu0 %vm201_vm2, %v443_v60 }
 0x6f3   :  { %1180 = vmatprep.mubr.msk.bf16.mxu0 %vm1239_vm1, %v1238_v16  ;;  %1173 = vmatpush3.bf16.msra.mxu0 %v1198_v39 }
 0x6f4   :  { %1174 = vmatprep.subr.bf16.mxu0 %v1238_v16 }
 0x6f7   :  { %1175 = vmatpush3.bf16.msra.mxu0 %v1199_v41 }
 0x6f8   :  { %1176 = vmatprep.subr.bf16.mxu0 %v1238_v16 }
 0x6fb   :  { %1177 = vmatpush3.bf16.msra.mxu0 %v1200_v42 }
 0x6fc   :  { %1178 = vmatprep.subr.bf16.mxu0 %v1238_v16 }
 0x6ff   :  { %1179 = vmatpush3.bf16.msra.mxu0 %v1201_v44 }
 0x7b9   :  { %v624_v48 = vpop.f32.mrb[16].mxu1 }
 0x7ba   :  { %v1144_v50 = vpop.f32.mrb[17].mxu1 }
 0x7bb   :  { %v627_v51 = vpop.f32.mrb[18].mxu1 }
 0x7bc   :  { %v1145_v52 = vpop.f32.mrb[19].mxu1 }
 0x7bd   :  { %v672_v53 = vpop.f32.mrb[12].mxu0 }
 0x7be   :  { %v678_v54 = vpack.c.bf16 %v672_v53, %v624_v48  ;;  %v1150_v57 = vpop.f32.mrb[13].mxu0 }
 0x7bf   :  { %v675_v56 = vpop.f32.mrb[14].mxu0 }
 0x7c0   :  { %v1151_v58 = vpop.f32.mrb[15].mxu0  ;;  %1155 = vmatmul.mubr.msk.bf16.vlgmr.msra.gmra.mrb[20].mxu1 %vm201_vm2, %v678_v54 }
 0x7c1   :  { %1168 = vmatprep.mubr.msk.bf16.mxu1 %vm1239_vm1, %v1238_v16  ;;  %1165 = vmatpush3.bf16.msra.mxu1 %v1196_v49 }
 0x7c2   :  { %1166 = vmatprep.subr.bf16.mxu1 %v1238_v16 }
 0x7c5   :  { %v774_v59 = vpop.f32.mrb[16].mxu0  ;;  %1167 = vmatpush3.bf16.msra.mxu1 %v1197_v25 }
 0x7c6   :  { %v1162_v60 = vpop.f32.mrb[17].mxu0 }
 0x7c7   :  { %v777_v61 = vpop.f32.mrb[18].mxu0 }
 0x7c8   :  { %v1163_v62 = vpop.f32.mrb[19].mxu0 }
 0x893   :  { %v724_v63 = vpop.f32.mrb[20].mxu1 }
 0x894   :  { %v775_v0 = vadd.f32 %v774_v59, %v724_v63  ;;  %v1156_v3 = vpop.f32.mrb[21].mxu1 }
 0x895   :  { %v727_v5 = vpop.f32.mrb[22].mxu1 }
 0x896   :  { %v781_v6 = vadd.f32 %v1329_v1, %v775_v0  ;;  %v778_v7 = vadd.f32 %v777_v61, %v727_v5  ;;  %v1157_v8 = vpop.f32.mrb[23].mxu1 }
 0x898   :  { %v1494_v9 = vadd.f32 %v1044_v4, %v781_v6  ;;  %v782_v10 = vadd.f32 %v1331_v2, %v778_v7 }
 0x89a   :  { %v1497_v11 = vadd.f32 %v1044_v4, %v782_v10  ;;  %v792_v12 = vsel %vm55_vm0, %v1494_v9, 0.0  ;;  %v1051_v10 = vld [vmem:[%s1564_s14] ss:$0 sm:$0xff] }
 0x89b   :  { %793 = vadd.xlane.f32.xlu1 %v792_v12 }
 0x89c   :  { %v795_v13 = vsel %vm55_vm0, %v1497_v11, 0.0 }
 0x89d   :  { %796 = vadd.xlane.f32.xlu0 %v795_v13 }
 0x928   :  { %v794_v15 = vpop.xlane.xlu1 %793 }
 0x929   :  { %v798_v17 = vmul.f32 0.03125, %v794_v15 }
 0x92a   :  { %v797_v19 = vpop.xlane.xlu0 %796 }
 0x92b   :  { %v800_v1 = vsub.f32 %v1494_v9, %v798_v17  ;;  %v799_v20 = vmul.f32 0.03125, %v797_v19 }
 0x92d   :  { %v801_v21 = vsub.f32 %v1497_v11, %v799_v20  ;;  %v802_v22 = vmul.f32 %v800_v1, %v800_v1 }
 0x92f   :  { %v804_v2 = vsel %vm55_vm0, %v802_v22, 0.0  ;;  %v803_v23 = vmul.f32 %v801_v21, %v801_v21 }
 0x930   :  { %805 = vadd.xlane.f32.xlu0 %v804_v2 }
 0x931   :  { %v807_v24 = vsel %vm55_vm0, %v803_v23, 0.0 }
 0x932   :  { %808 = vadd.xlane.f32.xlu1 %v807_v24 }
 0x9bd   :  { %v806_v26 = vpop.xlane.xlu0 %805 }
 0x9be   :  { %v810_v55 = vmul.f32 0.03125, %v806_v26 }
 0x9bf   :  { %v809_v27 = vpop.xlane.xlu1 %808 }
 0x9c0   :  { %v812_v28 = vadd.f32 1e-05, %v810_v55  ;;  %v811_v29 = vmul.f32 0.03125, %v809_v27 }
 0x9c2   :  { %1230 = vrsqrt.f32 %v812_v28  ;;  %v813_v30 = vadd.f32 1e-05, %v811_v29 }
 0x9c4   :  { %1232 = vrsqrt.f32 %v813_v30 }
 0x9cc   :  { %v1231_v14 = vpop.eup %1230 }
 0x9cd   :  { %v816_v32 = vmul.f32 %v1231_v14, %v800_v1 }
 0x9ce   :  { %v1233_v18 = vpop.eup %1232 }
 0x9cf   :  { %v825_v33 = vmul.f32 %v1045_v31, %v816_v32  ;;  %v817_v34 = vmul.f32 %v1233_v18, %v801_v21 }
 0x9d1   :  { %v826_v35 = vmul.f32 %v1045_v31, %v817_v34  ;;  %v834_v36 = vadd.f32 %v1046_v43, %v825_v33 }
 0x9d3   :  { %v835_v37 = vadd.f32 %v1046_v43, %v826_v35 }
 0x9d5   :  { %v836_v38 = vpack.c.bf16 %v835_v37, %v834_v36 }
 0x9d7   :  { %1169 = vmatmul.mubr.msk.bf16.vlgmr.msra.gmra.mrb[24].mxu1 %vm55_vm0, %v836_v38 }
 0xaaa   :  { %v897_v40 = vpop.f32.mrb[24].mxu1 }
 0xaab   :  { %v898_v46 = vadd.f32 %v1047_v45, %v897_v40  ;;  %v1170_v47 = vpop.f32.mrb[25].mxu1 }
 0xaac   :  { %v900_v48 = vpop.f32.mrb[26].mxu1 }
 0xaad   :  { %v904_v50 = vmul.f32 %v898_v46, %v898_v46  ;;  %v901_v51 = vadd.f32 %v1047_v45, %v900_v48  ;;  %v1171_v52 = vpop.f32.mrb[27].mxu1 }
 0xaaf   :  { %v906_v53 = vmul.f32 %v904_v50, %v898_v46  ;;  %v905_v54 = vmul.f32 %v901_v51, %v901_v51 }
 0xab1   :  { %v908_v57 = vmul.f32 0.044715, %v906_v53  ;;  %v907_v16 = vmul.f32 %v905_v54, %v901_v51 }
 0xab3   :  { %v910_v56 = vadd.f32 %v908_v57, %v898_v46  ;;  %v909_v58 = vmul.f32 0.044715, %v907_v16 }
 0xab5   :  { %v912_v59 = vmul.f32 0.7978846, %v910_v56  ;;  %v911_v60 = vadd.f32 %v909_v58, %v901_v51 }
 0xab7   :  { %1234 = vtanh.f32 %v912_v59  ;;  %v913_v61 = vmul.f32 0.7978846, %v911_v60 }
 0xab9   :  { %1236 = vtanh.f32 %v913_v61 }
 0xac1   :  { %v1235_v62 = vpop.eup %1234 }
 0xac2   :  { %v916_v63 = vadd.f32 1.0, %v1235_v62 }
 0xac3   :  { %v1237_v0 = vpop.eup %1236 }
 0xac4   :  { %v918_v3 = vmul.f32 0.5, %v916_v63  ;;  %v917_v4 = vadd.f32 1.0, %v1237_v0 }
 0xac6   :  { %v919_v5 = vmul.f32 0.5, %v917_v4  ;;  %v920_v6 = vmul.f32 %v918_v3, %v898_v46 }
 0xac8   :  { %v921_v7 = vmul.f32 %v919_v5, %v901_v51 }
 0xaca   :  { %v922_v8 = vpack.c.bf16 %v921_v7, %v920_v6 }
 0xacc   :  { %1181 = vmatmul.mubr.msk.bf16.vlgmr.msra.gmra.mrb[20].mxu0 %vm962_vm12, %v922_v8 }
 0xb9f   :  { %v1000_v12 = vpop.f32.mrb[20].mxu0 }
 0xba0   :  { %v1001_v13 = vadd.f32 %v1051_v10, %v1000_v12  ;;  %v1182_v15 = vpop.f32.mrb[21].mxu0 }
 0xba1   :  { %v1003_v17 = vpop.f32.mrb[22].mxu0 }
 0xba2   :  { %v1007_v19 = vadd.f32 %v1001_v13, %v1494_v9  ;;  %v1004_v1 = vadd.f32 %v1051_v10, %v1003_v17  ;;  %v1183_v20 = vpop.f32.mrb[23].mxu0 }
 0xba4   :  { %v1059_v21 = vpack.c.bf16 %v1007_v19, %v1007_v19  ;;  %v1008_v22 = vadd.f32 %v1004_v1, %v1497_v11 }
 0xba6   :  { %1018 = vst.msk [vmem:[%s1565_s15] sm:$0xf] %vm1017_vm13, %v1059_v21  ;;  %v1060_v2 = vpack.c.bf16 %v1008_v22, %v1008_v22 }
 0xba8   :  { %1019 = vst.msk [vmem:[%s1565_s15 + $0x4] sm:$0xf] %vm1017_vm13, %v1060_v2 }

// kernel: forward.3
= control target key start
LH: loop header
LB: loop body
LE: loop exit
PB: predicated region body
PF: predicated region fallthrough
CT: control target
= control target key end

     0   :  { %vm69_vm0 = vcmask 261120   ;;  %v1449_v16 = vmov 0.0   ;;  %vm1450_vm1 = vmmov 0   ;;  %vm215_vm2 = vcmask 130048   ;;  %s1455_s29 = smov 112   ;;  %s1456_s30 = smov 48   ;;  %s1822_s0 = inlined_call_operand.vmem [shape: bf16[16,32], index: 0, kind: input, shape index: {}]   ;;  %s1823_s5 = inlined_call_operand.vmem [shape: bf16[32,96], index: 5, kind: input, shape index: {}]   ;;  %s1824_s3 = inlined_call_operand.vmem [shape: f32[1,32], index: 3, kind: input, shape index: {}]   ;;  %s1825_s4 = inlined_call_operand.vmem [shape: f32[1,32], index: 4, kind: input, shape index: {}]   ;;  %s1826_s6 = inlined_call_operand.vmem [shape: f32[1,96], index: 6, kind: input, shape index: {}]   ;;  %s1827_s1 = inlined_call_operand.vmem [shape: f32[2,1,8], index: 1, kind: input, shape index: {}]   ;;  %s1828_s2 = inlined_call_operand.vmem [shape: f32[2,1,8], index: 2, kind: input, shape index: {}]   ;;  %s1829_s7 = inlined_call_operand.vmem [shape: bf16[32,32], index: 7, kind: input, shape index: {}]   ;;  %s1830_s8 = inlined_call_operand.vmem [shape: f32[1,32], index: 8, kind: input, shape index: {}]   ;;  %s1831_s11 = inlined_call_operand.vmem [shape: bf16[32,64], index: 11, kind: input, shape index: {}]   ;;  %s1832_s9 = inlined_call_operand.vmem [shape: f32[1,32], index: 9, kind: input, shape index: {}]   ;;  %s1833_s10 = inlined_call_operand.vmem [shape: f32[1,32], index: 10, kind: input, shape index: {}]   ;;  %s1834_s13 = inlined_call_operand.vmem [shape: bf16[64,32], index: 13, kind: input, shape index: {}]   ;;  %s1835_s12 = inlined_call_operand.vmem [shape: f32[1,64], index: 12, kind: input, shape index: {}]   ;;  %s1836_s15 = inlined_call_operand.vmem [shape: bf16[32,32], index: 15, kind: input, shape index: {}]   ;;  %s1837_s14 = inlined_call_operand.vmem [shape: f32[1,32], index: 14, kind: input, shape index: {}]   ;;  %s1838_s19 = inlined_call_operand.vmem [shape: bf16[16,32], index: 19, kind: output, shape index: {0}]   ;;  %s1839_s17 = inlined_call_operand.vmem [shape: bf16[32,16], index: 17, kind: input, shape index: {}]   ;;  %s1840_s16 = inlined_call_operand.vmem [shape: f32[1,32], index: 16, kind: input, shape index: {}]   ;;  %s1841_s18 = inlined_call_operand.vmem [shape: f32[1,16], index: 18, kind: input, shape index: {}]   ;;  %s1842_s20 = inlined_call_operand.vmem [shape: f32[16,16], index: 20, kind: output, shape index: {1}]  }
   0x1   :  { %1844 = sst [smem:[#allocation2_spill]] %s1822_s0  ;;  %1283 = vmatprep.subr.bf16.mxu0 %v1449_v16  ;;  %1291 = vmatprep.subr.bf16.mxu1 %v1449_v16  ;;  %v187_v48 = vlaneseq  ;;  %v1624_v49 = vld [vmem:[%s1827_s1] ss:$0 sm:$0xff]  ;;  %v1632_v55 = vld [vmem:[%s1827_s1 + $0x1] ss:$0 sm:$0xff]  ;;  %vm335_vm9 = vcmask 64512  }
   0x2   :  { %1845 = sst [smem:[#allocation3_spill]] %s1823_s5  ;;  %s1849_s23 = sld [smem:[#allocation2_spill]]  ;;  %1287 = vmatprep.mubr.msk.bf16.mxu0 %vm1450_vm1, %v1449_v16  ;;  %1293 = vmatprep.mubr.msk.bf16.mxu1 %vm1450_vm1, %v1449_v16  ;;  %v185_v53 = vld [vmem:[%s1828_s2] sm:$0x1]  ;;  %v186_v62 = vld [vmem:[%s1828_s2 + $0x1] sm:$0x1] }
   0x3   :  { %1846 = sst [smem:[#allocation4_spill]] %s1824_s3  ;;  %s1850_s25 = sld [smem:[#allocation3_spill]]  ;;  %v188_v57 = vshrl.u32 %v187_v48, 7  ;;  %vm192_vm3 = vcmp.gt.f32.partialorder %v185_v53, 0.5  ;;  %vm193_vm4 = vcmp.gt.f32.partialorder %v186_v62, 0.5  ;;  %vm365_vm11 = vcmask 1043456  }
   0x4   :  { %1847 = sst [smem:[#allocation5_spill]] %s1825_s4  ;;  %s1453_s1 = smov 64   ;;  %vm976_vm12 = vcmask 523264   ;;  %vm1031_vm13 = vcmask 257024  }
   0x5   :  { %1848 = sst [smem:[#allocation6_spill]] %s1826_s6  ;;  %s1851_s6 = sld [smem:[#allocation4_spill]] }
   0x6   :  { %s1852_s0 = sld [smem:[#allocation5_spill]]  ;;  %s1853_s22 = sld [smem:[#allocation6_spill]] }
   0x7   :  { %s1454_s2 = smov 80  }
   0x8   :  { %v1243_v0 = vld [vmem:[%s1849_s23] sm:$0xff]   ;;  %s1451_s23 = smov 96  }
   0x9   :  { %v1565_v1 = vunpack.c.l.bf16 %v1243_v0  ;;  %v1567_v2 = vunpack.c.h.bf16 %v1243_v0  ;;  %v1395_v15 = vld [vmem:[%s1850_s25] sm:$0xff]   ;;  %v1396_v17 = vld [vmem:[%s1850_s25 + $0x8] sm:$0xff]  }
   0xa   :  { %1284 = vmatpush3.bf16.msra.mxu0 %v1395_v15 }
   0xb   :  { %v70_v3 = vsel %vm69_vm0, %v1565_v1, 0.0  ;;  %v73_v4 = vsel %vm69_vm0, %v1567_v2, 0.0  ;;  %1285 = vmatprep.subr.bf16.mxu0 %v1449_v16  ;;  %v1197_v26 = vld [vmem:[%s1851_s6] ss:$0 sm:$0xff] }
   0xc   :  { %71 = vadd.xlane.f32.xlu0 %v70_v3  ;;  %v1198_v30 = vld [vmem:[%s1852_s0] ss:$0 sm:$0xff] }
   0xd   :  { %v1199_v35 = vld [vmem:[%s1853_s22] ss:$0 sm:$0xff] }
   0xe   :  { %1286 = vmatpush3.bf16.msra.mxu0 %v1396_v17 }
   0xf   :  { %1297 = vmatprep.subr.bf16.mxu0 %v1449_v16 }
  0x10   :  { %74 = vadd.xlane.f32.xlu0 %v73_v4 }
  0x99   :  { %v72_v5 = vpop.xlane.xlu0 %71 }
  0x9a   :  { %v77_v6 = vmul.f32 0.03125, %v72_v5  ;;  %v200_v5 = vsub.s32 0, %v188_v57 }
  0x9c   :  { %v79_v7 = vsub.f32 %v1565_v1, %v77_v6 }
  0x9d   :  { %v75_v8 = vpop.xlane.xlu0 %74 }
  0x9e   :  { %v78_v9 = vmul.f32 0.03125, %v75_v8  ;;  %v81_v10 = vmul.f32 %v79_v7, %v79_v7 }
  0xa0   :  { %v80_v11 = vsub.f32 %v1567_v2, %v78_v9  ;;  %v83_v12 = vsel %vm69_vm0, %v81_v10, 0.0  ;;  %v190_v10 = vand.u32 127, %v187_v48 }
  0xa1   :  { %84 = vadd.xlane.f32.xlu1 %v83_v12 }
  0xa2   :  { %v82_v13 = vmul.f32 %v80_v11, %v80_v11  ;;  %vm191_vm5 = vcmp.ge.s32.totalorder %v188_v57, %v190_v10 }
  0xa4   :  { %v86_v14 = vsel %vm69_vm0, %v82_v13, 0.0 }
  0xa5   :  { %87 = vadd.xlane.f32.xlu1 %v86_v14 }
 0x12e   :  { %v85_v18 = vpop.xlane.xlu1 %84 }
 0x12f   :  { %v89_v19 = vmul.f32 0.03125, %v85_v18 }
 0x131   :  { %v91_v20 = vadd.f32 1e-05, %v89_v19 }
 0x132   :  { %v88_v21 = vpop.xlane.xlu1 %87 }
 0x133   :  { %1409 = vrsqrt.f32 %v91_v20  ;;  %v90_v22 = vmul.f32 0.03125, %v88_v21 }
 0x135   :  { %v92_v23 = vadd.f32 1e-05, %v90_v22 }
 0x137   :  { %1411 = vrsqrt.f32 %v92_v23 }
 0x13d   :  { %v1410_v24 = vpop.eup %1409 }
 0x13e   :  { %v95_v25 = vmul.f32 %v1410_v24, %v79_v7  ;;  %v1452_v7 = vmov 0  }
 0x13f   :  { %v196_v8 = vsel %vm192_vm3, 1, %v1452_v7  ;;  %v197_v9 = vsel %vm193_vm4, 1, %v1452_v7 }
 0x140   :  { %v104_v29 = vmul.f32 %v1197_v26, %v95_v25  ;;  %v205_v12 = vrot.slane %v197_v9, %v200_v5 }
 0x141   :  { %v1412_v27 = vpop.eup %1411 }
 0x142   :  { %v96_v28 = vmul.f32 %v1412_v27, %v80_v11  ;;  %v113_v32 = vadd.f32 %v1198_v30, %v104_v29  ;;  %v201_v11 = vrot.slane %v196_v8, %v200_v5  ;;  %vm207_vm7 = vcmp.eq.s32.totalorder %v205_v12, 1 }
 0x143   :  { %vm1643_vm10 = vmand %vm191_vm5, %vm207_vm7 }
 0x144   :  { %v105_v31 = vmul.f32 %v1197_v26, %v96_v28  ;;  %vm206_vm6 = vcmp.eq.s32.totalorder %v201_v11, 1 }
 0x145   :  { %vm1639_vm8 = vmand %vm191_vm5, %vm206_vm6 }
 0x146   :  { %v114_v33 = vadd.f32 %v1198_v30, %v105_v31 }
 0x148   :  { %v115_v34 = vpack.c.bf16 %v114_v33, %v113_v32 }
 0x14a   :  { %1288 = vmatmul.mubr.msk.bf16.vlgmr.msra.gmra.mrb[0].mxu0 %vm69_vm0, %v115_v34 }
 0x14b   :  { %1299 = vmatprep.mubr.msk.bf16.mxu0 %vm1450_vm1, %v1449_v16 }
 0x21d   :  { %v176_v36 = vpop.f32.mrb[0].mxu0 }
 0x21e   :  { %v177_v37 = vadd.f32 %v1199_v35, %v176_v36  ;;  %v1289_v38 = vpop.f32.mrb[1].mxu0 }
 0x21f   :  { %v179_v39 = vpop.f32.mrb[2].mxu0 }
 0x220   :  { %v1603_v40 = vpack.c.bf16 %v177_v37, %v177_v37  ;;  %v180_v41 = vadd.f32 %v1199_v35, %v179_v39  ;;  %v1290_v42 = vpop.f32.mrb[3].mxu0 }
 0x222   :  { %v1605_v43 = vpack.c.bf16 %v180_v41, %v180_v41  ;;  %213 = vrot.lane.b32.xlu0 %v1603_v40, %s1451_s23 }
 0x224   :  { %263 = vrot.lane.b32.xlu1 %v1605_v43, %s1451_s23 }
 0x294   :  { %v214_v44 = vpop.permute.xlu0 %213 }
 0x295   :  { %v220_v45 = vsel %vm215_vm2, %v214_v44, 0 }
 0x296   :  { %1292 = vmatpush3.bf16.xpose.msra.mxu1 %v220_v45  ;;  %v264_v46 = vpop.permute.xlu1 %263 }
 0x297   :  { %v269_v47 = vsel %vm215_vm2, %v264_v46, 0  ;;  %1303 = vmatprep.subr.bf16.mxu1 %v1449_v16 }
 0x298   :  { %1298 = vmatpush3.bf16.xpose.msra.mxu0 %v269_v47 }
 0x299   :  { %1309 = vmatprep.subr.bf16.mxu0 %v1449_v16 }
 0x29d   :  { %1294 = vmatmul.mubr.msk.bf16.vlgmr.msra.gmra.mrb[0].mxu1 %vm215_vm2, %v1603_v40 }
 0x29e   :  { %1305 = vmatprep.mubr.msk.bf16.mxu1 %vm1450_vm1, %v1449_v16 }
 0x29f   :  { %1300 = vmatmul.mubr.msk.bf16.vlgmr.msra.gmra.mrb[4].mxu0 %vm215_vm2, %v1605_v43 }
 0x2a0   :  { %1311 = vmatprep.mubr.msk.bf16.mxu0 %vm1450_vm1, %v1449_v16 }
 0x370   :  { %v256_v50 = vpop.f32.mrb[0].mxu1 }
 0x371   :  { %v311_v51 = vmul.f32 0.25, %v256_v50  ;;  %v1295_v52 = vpop.f32.mrb[1].mxu1 }
 0x372   :  { %v259_v54 = vpop.f32.mrb[2].mxu1  ;;  %v305_v56 = vpop.f32.mrb[4].mxu0 }
 0x373   :  { %v325_v58 = vadd.f32 %v1624_v49, %v311_v51  ;;  %v312_v59 = vmul.f32 0.25, %v305_v56  ;;  %v1296_v60 = vpop.f32.mrb[3].mxu1  ;;  %v1301_v61 = vpop.f32.mrb[5].mxu0 }
 0x374   :  { %v308_v63 = vpop.f32.mrb[6].mxu0 }
 0x375   :  { %v327_v0 = vmul.f32 0.033333335, %v325_v58  ;;  %v326_v3 = vadd.f32 %v1632_v55, %v312_v59  ;;  %v1302_v4 = vpop.f32.mrb[7].mxu0 }
 0x377   :  { %1413 = vtanh.f32 %v327_v0  ;;  %v328_v6 = vmul.f32 0.033333335, %v326_v3 }
 0x379   :  { %1415 = vtanh.f32 %v328_v6 }
 0x381   :  { %v1414_v13 = vpop.eup %1413 }
 0x382   :  { %v331_v15 = vmul.f32 30.0, %v1414_v13 }
 0x383   :  { %v1416_v17 = vpop.eup %1415 }
 0x384   :  { %v333_v19 = vsel %vm1639_vm8, %v331_v15, -1e+30  ;;  %v332_v20 = vmul.f32 30.0, %v1416_v17 }
 0x385   :  { %v336_v21 = vsel %vm335_vm9, %v333_v19, -inf }
 0x386   :  { %337 = vmax.xlane.f32.xlu1 %v336_v21  ;;  %v334_v22 = vsel %vm1643_vm10, %v332_v20, -1e+30 }
 0x387   :  { %v339_v23 = vsel %vm335_vm9, %v334_v22, -inf }
 0x388   :  { %340 = vmax.xlane.f32.xlu0 %v339_v23 }
 0x397   :  { %409 = vrot.lane.b32.xlu1 %v1605_v43, %s1453_s1 }
 0x39b   :  { %462 = vrot.lane.b32.xlu1 %v1603_v40, %s1454_s2 }
 0x413   :  { %v338_v24 = vpop.xlane.xlu1 %337 }
 0x414   :  { %v342_v25 = vsub.f32 %v333_v19, %v338_v24 }
 0x415   :  { %v341_v26 = vpop.xlane.xlu0 %340 }
 0x416   :  { %v344_v27 = vmul.f32 1.442695, %v342_v25  ;;  %v343_v28 = vsub.f32 %v334_v22, %v341_v26 }
 0x417   :  { %v410_v29 = vpop.permute.xlu1 %409 }
 0x418   :  { %1417 = vpow2.f32 %v344_v27  ;;  %v346_v30 = vmul.f32 1.442695, %v343_v28  ;;  %v415_v31 = vsel %vm365_vm11, %v410_v29, 0 }
 0x419   :  { %1310 = vmatpush3.bf16.msra.mxu0 %v415_v31 }
 0x41a   :  { %1419 = vpow2.f32 %v346_v30  ;;  %1321 = vmatprep.subr.bf16.mxu0 %v1449_v16 }
 0x41b   :  { %v463_v36 = vpop.permute.xlu1 %462 }
 0x41c   :  { %v468_v50 = vsel %vm215_vm2, %v463_v36, 0 }
 0x422   :  { %v1418_v32 = vpop.eup %1417 }
 0x423   :  { %v348_v33 = vsel %vm335_vm9, %v1418_v32, 0.0 }
 0x424   :  { %v1420_v34 = vpop.eup %1419  ;;  %349 = vadd.xlane.f32.xlu0 %v348_v33 }
 0x425   :  { %v351_v35 = vsel %vm335_vm9, %v1420_v34, 0.0 }
 0x426   :  { %352 = vadd.xlane.f32.xlu1 %v351_v35 }
 0x437   :  { %512 = vrot.lane.b32.xlu1 %v1605_v43, %s1454_s2 }
 0x43a   :  { %360 = vrot.lane.b32.xlu0 %v1603_v40, %s1453_s1 }
 0x43b   :  { %510 = vrot.lane.b32.xlu1 %v1605_v43, %s1455_s29 }
 0x43e   :  { %460 = vrot.lane.b32.xlu0 %v1603_v40, %s1455_s29 }
 0x4b1   :  { %v350_v37 = vpop.xlane.xlu0 %349 }
 0x4b2   :  { %1421 = vrcp.f32 %v350_v37 }
 0x4b3   :  { %v353_v38 = vpop.xlane.xlu1 %352 }
 0x4b4   :  { %1423 = vrcp.f32 %v353_v38 }
 0x4b5   :  { %v361_v39 = vpop.permute.xlu0 %360 }
 0x4b6   :  { %v367_v41 = vsel %vm365_vm11, %v361_v39, 0 }
 0x4b7   :  { %1304 = vmatpush3.bf16.msra.mxu1 %v367_v41  ;;  %v513_v48 = vpop.permute.xlu1 %512 }
 0x4b8   :  { %1315 = vmatprep.subr.bf16.mxu1 %v1449_v16  ;;  %v518_v52 = vsel %vm215_vm2, %v513_v48, 0 }
 0x4b9   :  { %v461_v53 = vpop.permute.xlu0 %460 }
 0x4bb   :  { %v511_v54 = vpop.permute.xlu1 %510 }
 0x4bc   :  { %v1422_v42 = vpop.eup %1421 }
 0x4bd   :  { %v355_v44 = vmul.f32 %v1422_v42, %v1418_v32  ;;  %v1398_v42 = vld [vmem:[%s1829_s7 + $0x8] sm:$0xff]  }
 0x4be   :  { %v1424_v45 = vpop.eup %1423 }
 0x4bf   :  { %v357_v46 = vmul.f32 %v1424_v45, %v1420_v34  ;;  %v358_v47 = vpack.c.bf16 %v355_v44, %v355_v44 }
 0x4c1   :  { %1306 = vmatmul.mubr.msk.bf16.vlgmr.msra.gmra.mrb[4].mxu1 %vm335_vm9, %v358_v47  ;;  %v359_v51 = vpack.c.bf16 %v357_v46, %v357_v46 }
 0x4c2   :  { %1316 = vmatpush3.bf16.xpose.msra.mxu1 %v468_v50  ;;  %1317 = vmatprep.mubr.msk.bf16.mxu1 %vm1450_vm1, %v1449_v16 }
 0x4c3   :  { %1312 = vmatmul.mubr.msk.bf16.vlgmr.msra.gmra.mrb[8].mxu0 %vm335_vm9, %v359_v51  ;;  %1327 = vmatprep.subr.bf16.mxu1 %v1449_v16 }
 0x4c4   :  { %1322 = vmatpush3.bf16.xpose.msra.mxu0 %v518_v52  ;;  %1323 = vmatprep.mubr.msk.bf16.mxu0 %vm1450_vm1, %v1449_v16 }
 0x4c5   :  { %1333 = vmatprep.subr.bf16.mxu0 %v1449_v16 }
 0x4c9   :  { %1318 = vmatmul.mubr.msk.bf16.vlgmr.msra.gmra.mrb[8].mxu1 %vm215_vm2, %v461_v53 }
 0x4ca   :  { %1329 = vmatprep.mubr.msk.bf16.mxu1 %vm1450_vm1, %v1449_v16 }
 0x4cb   :  { %1324 = vmatmul.mubr.msk.bf16.vlgmr.msra.gmra.mrb[12].mxu0 %vm215_vm2, %v511_v54 }
 0x4cc   :  { %1335 = vmatprep.mubr.msk.bf16.mxu0 %vm1450_vm1, %v1449_v16 }
 0x594   :  { %v1681_v56 = vpop.f32.mrb[4].mxu1 }
 0x595   :  { %v1307_v57 = vpop.f32.mrb[5].mxu1 }
 0x596   :  { %v406_v58 = vpop.f32.mrb[6].mxu1  ;;  %v1683_v59 = vpop.f32.mrb[8].mxu0 }
 0x597   :  { %v457_v60 = vpack.c.bf16 %v1683_v59, %v1681_v56  ;;  %v1308_v61 = vpop.f32.mrb[7].mxu1  ;;  %v1313_v62 = vpop.f32.mrb[9].mxu0 }
 0x598   :  { %v454_v63 = vpop.f32.mrb[10].mxu0 }
 0x599   :  { %v1314_v0 = vpop.f32.mrb[11].mxu0 }
 0x59c   :  { %v504_v3 = vpop.f32.mrb[8].mxu1 }
 0x59d   :  { %v560_v4 = vmul.f32 0.25, %v504_v3  ;;  %v1319_v5 = vpop.f32.mrb[9].mxu1 }
 0x59e   :  { %v507_v6 = vpop.f32.mrb[10].mxu1  ;;  %v554_v7 = vpop.f32.mrb[12].mxu0 }
 0x59f   :  { %v562_v8 = vadd.f32 %v1624_v49, %v560_v4  ;;  %v561_v9 = vmul.f32 0.25, %v554_v7  ;;  %v1320_v10 = vpop.f32.mrb[11].mxu1  ;;  %v1325_v11 = vpop.f32.mrb[13].mxu0  ;;  %v1217_v4 = vld [vmem:[%s1830_s8] ss:$0 sm:$0xff] }
 0x5a0   :  { %v557_v12 = vpop.f32.mrb[14].mxu0 }
 0x5a1   :  { %v564_v13 = vmul.f32 0.033333335, %v562_v8  ;;  %v563_v15 = vadd.f32 %v1632_v55, %v561_v9  ;;  %v1326_v17 = vpop.f32.mrb[15].mxu0 }
 0x5a3   :  { %1425 = vtanh.f32 %v564_v13  ;;  %v565_v19 = vmul.f32 0.033333335, %v563_v15 }
 0x5a5   :  { %1427 = vtanh.f32 %v565_v19 }
 0x5ad   :  { %v1426_v20 = vpop.eup %1425 }
 0x5ae   :  { %v568_v21 = vmul.f32 30.0, %v1426_v20 }
 0x5af   :  { %v1428_v22 = vpop.eup %1427 }
 0x5b0   :  { %v570_v23 = vsel %vm1639_vm8, %v568_v21, -1e+30  ;;  %v569_v24 = vmul.f32 30.0, %v1428_v22 }
 0x5b1   :  { %v572_v49 = vsel %vm335_vm9, %v570_v23, -inf }
 0x5b2   :  { %573 = vmax.xlane.f32.xlu0 %v572_v49  ;;  %v571_v25 = vsel %vm1643_vm10, %v569_v24, -1e+30  ;;  %v1399_v49 = vld [vmem:[%s1831_s11] sm:$0xff]  }
 0x5b3   :  { %v575_v26 = vsel %vm335_vm9, %v571_v25, -inf }
 0x5b4   :  { %576 = vmax.xlane.f32.xlu1 %v575_v26 }
 0x5c5   :  { %644 = vrot.lane.b32.xlu1 %v1605_v43, %s1456_s30 }
 0x63f   :  { %v574_v55 = vpop.xlane.xlu0 %573 }
 0x640   :  { %v578_v27 = vsub.f32 %v570_v23, %v574_v55 }
 0x641   :  { %v577_v28 = vpop.xlane.xlu1 %576 }
 0x642   :  { %v580_v29 = vmul.f32 1.442695, %v578_v27  ;;  %v579_v30 = vsub.f32 %v571_v25, %v577_v28  ;;  %v1400_v25 = vld [vmem:[%s1831_s11 + $0x8] sm:$0xff]  }
 0x644   :  { %1429 = vpow2.f32 %v580_v29  ;;  %v582_v14 = vmul.f32 1.442695, %v579_v30 }
 0x645   :  { %v645_v31 = vpop.permute.xlu1 %644 }
 0x646   :  { %1431 = vpow2.f32 %v582_v14  ;;  %v650_v32 = vsel %vm365_vm11, %v645_v31, 0  ;;  %v1218_v31 = vld [vmem:[%s1832_s9] ss:$0 sm:$0xff] }
 0x647   :  { %1334 = vmatpush3.bf16.msra.mxu0 %v650_v32 }
 0x648   :  { %1345 = vmatprep.subr.bf16.mxu0 %v1449_v16 }
 0x64e   :  { %v1430_v18 = vpop.eup %1429 }
 0x64f   :  { %v584_v33 = vsel %vm335_vm9, %v1430_v18, 0.0 }
 0x650   :  { %v1432_v34 = vpop.eup %1431  ;;  %585 = vadd.xlane.f32.xlu0 %v584_v33 }
 0x651   :  { %v587_v43 = vsel %vm335_vm9, %v1432_v34, 0.0 }
 0x654   :  { %588 = vadd.xlane.f32.xlu0 %v587_v43  ;;  %v1219_v43 = vld [vmem:[%s1833_s10] ss:$0 sm:$0xff] }
 0x66a   :  { %596 = vrot.lane.b32.xlu0 %v1603_v40, %s1456_s30  ;;  %v1397_v40 = vld [vmem:[%s1829_s7] sm:$0xff]  }
 0x6dd   :  { %v586_v35 = vpop.xlane.xlu0 %585 }
 0x6de   :  { %1433 = vrcp.f32 %v586_v35 }
 0x6e1   :  { %v589_v36 = vpop.xlane.xlu0 %588 }
 0x6e2   :  { %1435 = vrcp.f32 %v589_v36 }
 0x6e5   :  { %v597_v37 = vpop.permute.xlu0 %596 }
 0x6e6   :  { %v602_v38 = vsel %vm365_vm11, %v597_v37, 0 }
 0x6e7   :  { %1328 = vmatpush3.bf16.msra.mxu1 %v602_v38 }
 0x6e8   :  { %v1434_v39 = vpop.eup %1433  ;;  %1339 = vmatprep.subr.bf16.mxu1 %v1449_v16 }
 0x6e9   :  { %v591_v41 = vmul.f32 %v1434_v39, %v1430_v18  ;;  %v1401_v39 = vld [vmem:[%s1834_s13] sm:$0xff]  }
 0x6eb   :  { %v594_v44 = vpack.c.bf16 %v591_v41, %v591_v41  ;;  %v1402_v41 = vld [vmem:[%s1834_s13 + $0x8] sm:$0xff]  }
 0x6ec   :  { %v1436_v45 = vpop.eup %1435 }
 0x6ed   :  { %v593_v46 = vmul.f32 %v1436_v45, %v1432_v34  ;;  %1330 = vmatmul.mubr.msk.bf16.vlgmr.msra.gmra.mrb[12].mxu1 %vm335_vm9, %v594_v44  ;;  %v1404_v44 = vld [vmem:[%s1834_s13 + $0x18] sm:$0xff]   ;;  %v1220_v45 = vld [vmem:[%s1835_s12] ss:$0 sm:$0xff] }
 0x6ee   :  { %1340 = vmatpush3.bf16.msra.mxu1 %v1398_v42  ;;  %1341 = vmatprep.mubr.msk.bf16.mxu1 %vm1450_vm1, %v1449_v16  ;;  %v1403_v42 = vld [vmem:[%s1834_s13 + $0x10] sm:$0xff]  }
 0x6ef   :  { %v595_v47 = vpack.c.bf16 %v593_v46, %v593_v46  ;;  %1351 = vmatprep.subr.bf16.mxu1 %v1449_v16 }
 0x6f1   :  { %1336 = vmatmul.mubr.msk.bf16.vlgmr.msra.gmra.mrb[16].mxu0 %vm335_vm9, %v595_v47 }
 0x6f2   :  { %1346 = vmatpush3.bf16.msra.mxu0 %v1397_v40  ;;  %1347 = vmatprep.mubr.msk.bf16.mxu0 %vm1450_vm1, %v1449_v16 }
 0x6f3   :  { %1359 = vmatprep.subr.bf16.mxu0 %v1449_v16 }
 0x6f9   :  { %1348 = vmatmul.mubr.msk.bf16.vlgmr.msra.gmra.mrb[20].mxu0 %vm215_vm2, %v457_v60 }
 0x6fa   :  { %1367 = vmatprep.mubr.msk.bf16.mxu0 %vm1450_vm1, %v1449_v16  ;;  %1360 = vmatpush3.bf16.msra.mxu0 %v1401_v39 }
 0x6fb   :  { %1361 = vmatprep.subr.bf16.mxu0 %v1449_v16 }
 0x6fe   :  { %1362 = vmatpush3.bf16.msra.mxu0 %v1402_v41 }
 0x6ff   :  { %1363 = vmatprep.subr.bf16.mxu0 %v1449_v16 }
 0x702   :  { %1364 = vmatpush3.bf16.msra.mxu0 %v1403_v42 }
 0x703   :  { %1365 = vmatprep.subr.bf16.mxu0 %v1449_v16 }
 0x706   :  { %1366 = vmatpush3.bf16.msra.mxu0 %v1404_v44 }
 0x7c0   :  { %v638_v48 = vpop.f32.mrb[12].mxu1 }
 0x7c1   :  { %v1331_v50 = vpop.f32.mrb[13].mxu1 }
 0x7c2   :  { %v641_v51 = vpop.f32.mrb[14].mxu1 }
 0x7c3   :  { %v1332_v52 = vpop.f32.mrb[15].mxu1 }
 0x7c4   :  { %v686_v53 = vpop.f32.mrb[16].mxu0 }
 0x7c5   :  { %v692_v54 = vpack.c.bf16 %v686_v53, %v638_v48  ;;  %v1337_v57 = vpop.f32.mrb[17].mxu0 }
 0x7c6   :  { %v689_v58 = vpop.f32.mrb[18].mxu0 }
 0x7c7   :  { %v1338_v61 = vpop.f32.mrb[19].mxu0  ;;  %1342 = vmatmul.mubr.msk.bf16.vlgmr.msra.gmra.mrb[16].mxu1 %vm215_vm2, %v692_v54 }
 0x7c8   :  { %1355 = vmatprep.mubr.msk.bf16.mxu1 %vm1450_vm1, %v1449_v16  ;;  %1352 = vmatpush3.bf16.msra.mxu1 %v1399_v49 }
 0x7c9   :  { %1353 = vmatprep.subr.bf16.mxu1 %v1449_v16 }
 0x7cc   :  { %v788_v56 = vpop.f32.mrb[20].mxu0  ;;  %1354 = vmatpush3.bf16.msra.mxu1 %v1400_v25 }
 0x7cd   :  { %v1349_v59 = vpop.f32.mrb[21].mxu0  ;;  %1371 = vmatprep.subr.bf16.mxu1 %v1449_v16 }
 0x7ce   :  { %v791_v60 = vpop.f32.mrb[22].mxu0 }
 0x7cf   :  { %v1350_v62 = vpop.f32.mrb[23].mxu0 }
 0x89a   :  { %v738_v63 = vpop.f32.mrb[16].mxu1 }
 0x89b   :  { %v789_v0 = vadd.f32 %v788_v56, %v738_v63  ;;  %v1343_v3 = vpop.f32.mrb[17].mxu1 }
 0x89c   :  { %v741_v5 = vpop.f32.mrb[18].mxu1 }
 0x89d   :  { %v795_v6 = vadd.f32 %v1565_v1, %v789_v0  ;;  %v792_v7 = vadd.f32 %v791_v60, %v741_v5  ;;  %v1344_v8 = vpop.f32.mrb[19].mxu1 }
 0x89f   :  { %v1730_v9 = vadd.f32 %v1217_v4, %v795_v6  ;;  %v796_v10 = vadd.f32 %v1567_v2, %v792_v7 }
 0x8a1   :  { %v1733_v11 = vadd.f32 %v1217_v4, %v796_v10  ;;  %v806_v12 = vsel %vm69_vm0, %v1730_v9, 0.0 }
 0x8a2   :  { %807 = vadd.xlane.f32.xlu1 %v806_v12  ;;  %v1405_v12 = vld [vmem:[%s1836_s15] sm:$0xff]  }
 0x8a3   :  { %v809_v13 = vsel %vm69_vm0, %v1733_v11, 0.0 }
 0x8a4   :  { %810 = vadd.xlane.f32.xlu0 %v809_v13  ;;  %v1406_v13 = vld [vmem:[%s1836_s15 + $0x8] sm:$0xff]  }
 0x92f   :  { %v808_v15 = vpop.xlane.xlu1 %807 }
 0x930   :  { %v812_v17 = vmul.f32 0.03125, %v808_v15  ;;  %v1224_v15 = vld [vmem:[%s1837_s14] ss:$0 sm:$0xff] }
 0x931   :  { %v811_v19 = vpop.xlane.xlu0 %810 }
 0x932   :  { %v814_v1 = vsub.f32 %v1730_v9, %v812_v17  ;;  %v813_v20 = vmul.f32 0.03125, %v811_v19 }
 0x934   :  { %v815_v21 = vsub.f32 %v1733_v11, %v813_v20  ;;  %v816_v22 = vmul.f32 %v814_v1, %v814_v1 }
 0x936   :  { %v818_v2 = vsel %vm69_vm0, %v816_v22, 0.0  ;;  %v817_v23 = vmul.f32 %v815_v21, %v815_v21 }
 0x937   :  { %819 = vadd.xlane.f32.xlu0 %v818_v2 }
 0x938   :  { %v821_v24 = vsel %vm69_vm0, %v817_v23, 0.0 }
 0x939   :  { %822 = vadd.xlane.f32.xlu1 %v821_v24 }
 0x9c4   :  { %v820_v26 = vpop.xlane.xlu0 %819 }
 0x9c5   :  { %v824_v55 = vmul.f32 0.03125, %v820_v26  ;;  %v1232_v26 = vld [vmem:[%s1840_s16] ss:$0 sm:$0xff] }
 0x9c6   :  { %v823_v27 = vpop.xlane.xlu1 %822 }
 0x9c7   :  { %v826_v28 = vadd.f32 1e-05, %v824_v55  ;;  %v825_v29 = vmul.f32 0.03125, %v823_v27 }
 0x9c9   :  { %1437 = vrsqrt.f32 %v826_v28  ;;  %v827_v30 = vadd.f32 1e-05, %v825_v29 }
 0x9cb   :  { %1439 = vrsqrt.f32 %v827_v30 }
 0x9d3   :  { %v1438_v14 = vpop.eup %1437 }
 0x9d4   :  { %v830_v32 = vmul.f32 %v1438_v14, %v814_v1 }
 0x9d5   :  { %v1440_v18 = vpop.eup %1439 }
 0x9d6   :  { %v839_v33 = vmul.f32 %v1218_v31, %v830_v32  ;;  %v831_v34 = vmul.f32 %v1440_v18, %v815_v21 }
 0x9d8   :  { %v840_v35 = vmul.f32 %v1218_v31, %v831_v34  ;;  %v848_v36 = vadd.f32 %v1219_v43, %v839_v33 }
 0x9da   :  { %v849_v37 = vadd.f32 %v1219_v43, %v840_v35 }
 0x9dc   :  { %v850_v38 = vpack.c.bf16 %v849_v37, %v848_v36 }
 0x9de   :  { %1356 = vmatmul.mubr.msk.bf16.vlgmr.msra.gmra.mrb[20].mxu1 %vm69_vm0, %v850_v38 }
 0x9df   :  { %1375 = vmatprep.mubr.msk.bf16.mxu1 %vm1450_vm1, %v1449_v16  ;;  %1372 = vmatpush3.bf16.msra.mxu1 %v1405_v12 }
 0x9e0   :  { %1373 = vmatprep.subr.bf16.mxu1 %v1449_v16 }
 0x9e3   :  { %1374 = vmatpush3.bf16.msra.mxu1 %v1406_v13 }
 0x9e4   :  { %1379 = vmatprep.subr.bf16.mxu1 %v1449_v16 }
 0xab1   :  { %v911_v46 = vpop.f32.mrb[20].mxu1 }
 0xab2   :  { %v912_v40 = vadd.f32 %v1220_v45, %v911_v46  ;;  %v1357_v47 = vpop.f32.mrb[21].mxu1 }
 0xab3   :  { %v914_v48 = vpop.f32.mrb[22].mxu1 }
 0xab4   :  { %v918_v50 = vmul.f32 %v912_v40, %v912_v40  ;;  %v915_v51 = vadd.f32 %v1220_v45, %v914_v48  ;;  %v1358_v52 = vpop.f32.mrb[23].mxu1  ;;  %v1236_v48 = vld [vmem:[%s1841_s18] ss:$0 sm:$0xff] }
 0xab6   :  { %v920_v53 = vmul.f32 %v918_v50, %v912_v40  ;;  %v919_v54 = vmul.f32 %v915_v51, %v915_v51 }
 0xab8   :  { %v922_v57 = vmul.f32 0.044715, %v920_v53  ;;  %v921_v58 = vmul.f32 %v919_v54, %v915_v51 }
 0xaba   :  { %v924_v61 = vadd.f32 %v922_v57, %v912_v40  ;;  %v923_v56 = vmul.f32 0.044715, %v921_v58 }
 0xabc   :  { %v926_v59 = vmul.f32 0.7978846, %v924_v61  ;;  %v925_v60 = vadd.f32 %v923_v56, %v915_v51 }
 0xabe   :  { %1441 = vtanh.f32 %v926_v59  ;;  %v927_v62 = vmul.f32 0.7978846, %v925_v60 }
 0xac0   :  { %1443 = vtanh.f32 %v927_v62 }
 0xac8   :  { %v1442_v63 = vpop.eup %1441 }
 0xac9   :  { %v930_v0 = vadd.f32 1.0, %v1442_v63 }
 0xaca   :  { %v1444_v3 = vpop.eup %1443 }
 0xacb   :  { %v932_v4 = vmul.f32 0.5, %v930_v0  ;;  %v931_v5 = vadd.f32 1.0, %v1444_v3 }
 0xacd   :  { %v933_v6 = vmul.f32 0.5, %v931_v5  ;;  %v934_v7 = vmul.f32 %v932_v4, %v912_v40 }
 0xacf   :  { %v935_v8 = vmul.f32 %v933_v6, %v915_v51 }
 0xad1   :  { %v936_v10 = vpack.c.bf16 %v935_v8, %v934_v7 }
 0xad3   :  { %1368 = vmatmul.mubr.msk.bf16.vlgmr.msra.gmra.mrb[24].mxu0 %vm976_vm12, %v936_v10 }
 0xba6   :  { %v1014_v17 = vpop.f32.mrb[24].mxu0 }
 0xba7   :  { %v1015_v19 = vadd.f32 %v1224_v15, %v1014_v17  ;;  %v1369_v1 = vpop.f32.mrb[25].mxu0 }
 0xba8   :  { %v1017_v20 = vpop.f32.mrb[26].mxu0 }
 0xba9   :  { %v1021_v21 = vadd.f32 %v1015_v19, %v1730_v9  ;;  %v1018_v22 = vadd.f32 %v1224_v15, %v1017_v20  ;;  %v1370_v2 = vpop.f32.mrb[27].mxu0  ;;  %v1407_v9 = vld [vmem:[%s1839_s17] sm:$0xff]  }
 0xbab   :  { %v1240_v23 = vpack.c.bf16 %v1021_v21, %v1021_v21  ;;  %v1022_v24 = vadd.f32 %v1018_v22, %v1733_v11  ;;  %v1408_v11 = vld [vmem:[%s1839_s17 + $0x8] sm:$0xff]  }
 0xbad   :  { %1032 = vst.msk [vmem:[%s1838_s19] sm:$0xf] %vm1031_vm13, %v1240_v23  ;;  %v1023_v49 = vpack.c.bf16 %v1022_v24, %v1021_v21  ;;  %v1241_v25 = vpack.c.bf16 %v1022_v24, %v1022_v24 }
 0xbaf   :  { %1033 = vst.msk [vmem:[%s1838_s19 + $0x4] sm:$0xf] %vm1031_vm13, %v1241_v25  ;;  %1376 = vmatmul.mubr.msk.bf16.vlgmr.msra.gmra.mrb[24].mxu1 %vm69_vm0, %v1023_v49 }
 0xbb0   :  { %1383 = vmatprep.mubr.msk.bf16.mxu1 %vm1450_vm1, %v1449_v16  ;;  %1380 = vmatpush3.bf16.msra.mxu1 %v1407_v9 }
 0xbb1   :  { %1381 = vmatprep.subr.bf16.mxu1 %v1449_v16 }
 0xbb4   :  { %1382 = vmatpush3.bf16.msra.mxu1 %v1408_v11 }
 0xc82   :  { %v1094_v55 = vpop.f32.mrb[24].mxu1 }
 0xc83   :  { %v1095_v27 = vadd.f32 %v1232_v26, %v1094_v55  ;;  %v1377_v28 = vpop.f32.mrb[25].mxu1 }
 0xc84   :  { %v1097_v29 = vpop.f32.mrb[26].mxu1 }
 0xc85   :  { %v1101_v30 = vmul.f32 %v1095_v27, %v1095_v27  ;;  %v1098_v14 = vadd.f32 %v1232_v26, %v1097_v29  ;;  %v1378_v31 = vpop.f32.mrb[27].mxu1 }
 0xc87   :  { %v1103_v32 = vmul.f32 %v1101_v30, %v1095_v27  ;;  %v1102_v18 = vmul.f32 %v1098_v14, %v1098_v14 }
 0xc89   :  { %v1105_v33 = vmul.f32 0.044715, %v1103_v32  ;;  %v1104_v16 = vmul.f32 %v1102_v18, %v1098_v14 }
 0xc8b   :  { %v1107_v34 = vadd.f32 %v1105_v33, %v1095_v27  ;;  %v1106_v43 = vmul.f32 0.044715, %v1104_v16 }
 0xc8d   :  { %v1109_v35 = vmul.f32 0.7978846, %v1107_v34  ;;  %v1108_v36 = vadd.f32 %v1106_v43, %v1098_v14 }
 0xc8f   :  { %1445 = vtanh.f32 %v1109_v35  ;;  %v1110_v37 = vmul.f32 0.7978846, %v1108_v36 }
 0xc91   :  { %1447 = vtanh.f32 %v1110_v37 }
 0xc99   :  { %v1446_v38 = vpop.eup %1445 }
 0xc9a   :  { %v1113_v39 = vadd.f32 1.0, %v1446_v38 }
 0xc9b   :  { %v1448_v41 = vpop.eup %1447 }
 0xc9c   :  { %v1115_v42 = vmul.f32 0.5, %v1113_v39  ;;  %v1114_v44 = vadd.f32 1.0, %v1448_v41 }
 0xc9e   :  { %v1116_v45 = vmul.f32 0.5, %v1114_v44  ;;  %v1117_v46 = vmul.f32 %v1115_v42, %v1095_v27 }
 0xca0   :  { %v1118_v40 = vmul.f32 %v1116_v45, %v1098_v14 }
 0xca2   :  { %v1119_v47 = vpack.c.bf16 %v1118_v40, %v1117_v46 }
 0xca4   :  { %1384 = vmatmul.mubr.msk.bf16.vlgmr.msra.gmra.mrb[28].mxu1 %vm69_vm0, %v1119_v47 }
 0xd77   :  { %v1180_v50 = vpop.f32.mrb[28].mxu1 }
 0xd78   :  { %v1181_v51 = vadd.f32 %v1236_v48, %v1180_v50  ;;  %v1385_v52 = vpop.f32.mrb[29].mxu1 }
 0xd79   :  { %v1183_v53 = vpop.f32.mrb[30].mxu1 }
 0xd7a   :  { %1187 = vst.msk [vmem:[%s1842_s20] sm:$0xff] %vm215_vm2, %v1181_v51  ;;  %v1184_v54 = vadd.f32 %v1236_v48, %v1183_v53  ;;  %v1386_v57 = vpop.f32.mrb[31].mxu1 }
 0xd7c   :  { %1188 = vst.msk [vmem:[%s1842_s20 + $0x8] sm:$0xff] %vm215_vm2, %v1184_v54 }

</bundles_post_ra>
